<compile_context>
chip_gen: v5e
topology: v5e:2x2
jax: 0.10.0
libtpu: 0.0.40
codegen_flags: <defaults>
</compile_context>

<pallas_src>
import functools
import math

import jax
import jax.numpy as jnp
from jax import lax
from jax.experimental import pallas as pl
from jax.experimental.pallas import tpu as pltpu


def _round_up(x, m):
    return ((x + m - 1) // m) * m


def _pick_t_chunk(T, t_chunk_max=16):
    """Largest divisor of T that is <= t_chunk_max (keeps the time grid uniform)."""
    for c in range(min(T, t_chunk_max), 0, -1):
        if T % c == 0:
            return c
    return 1


def _lstm_predictor_kernel(gx_ref, whh_ref, wout_ref, bout_ref, out_ref,
                           h_scr, c_scr, *, hidden_pad, t_chunk):
    """Grid = (batch_tiles [parallel], time_chunks [arbitrary]).

    Each grid step runs `t_chunk` LSTM timesteps for one batch tile via an
    unrolled in-kernel loop; h/c are carried across time chunks in VMEM scratch.
    gx_ref already contains x_t @ W_ih^T + (b_ih + b_hh), so the recurrence is
    just one MXU matmul + VPU/EUP gate math per step.  On the last time chunk
    the final Linear layer is applied to h_T (lane-dense 128-wide output).
    """
    ck = pl.program_id(1)
    H = hidden_pad

    @pl.when(ck == 0)
    def _():
        h_scr[...] = jnp.zeros_like(h_scr)
        c_scr[...] = jnp.zeros_like(c_scr)

    whh = whh_ref[...]                      # (H_pad, 4*H_pad), bf16 or f32

    def step(t, carry):
        h, c = carry
        # Recurrent matmul on the MXU with f32 accumulation; bias + input
        # projection already folded into gx (no per-step broadcast/add of bias).
        gates = gx_ref[t] + jnp.dot(h.astype(whh.dtype), whh,
                                    preferred_element_type=jnp.float32)
        # Each gate occupies whole 128-lane tiles (H padded to 128) -> pure VPU/EUP.
        i_g = jax.nn.sigmoid(gates[:, 0 * H:1 * H])
        f_g = jax.nn.sigmoid(gates[:, 1 * H:2 * H])
        g_g = jnp.tanh(gates[:, 2 * H:3 * H])
        o_g = jax.nn.sigmoid(gates[:, 3 * H:4 * H])
        c = f_g * c + i_g * g_g
        h = o_g * jnp.tanh(c)
        return h, c

    h, c = lax.fori_loop(0, t_chunk, step, (h_scr[...], c_scr[...]),
                         unroll=True)
    h_scr[...] = h
    c_scr[...] = c

    @pl.when(ck == pl.num_programs(1) - 1)
    def _():
        wout = wout_ref[...]                # (H_pad, O_pad)
        out_ref[...] = (jnp.dot(h.astype(wout.dtype), wout,
                                preferred_element_type=jnp.float32)
                        + bout_ref[...]).astype(out_ref.dtype)


def predictor_forward(x_btd, params, *, matmul_dtype=jnp.bfloat16,
                      t_chunk_max=16, b_tile=8):
    """x_btd: (B, T, D) float32, PyTorch batch_first layout. Returns (B, O)."""
    w_ih, w_hh, b_ih, b_hh, w_out, b_out = params   # raw PyTorch-shaped params
    B, T, D = x_btd.shape
    H = w_hh.shape[1]
    O = w_out.shape[0]
    assert T >= 1, "empty sequence has no last timestep"

    H_pad = _round_up(H, 128)        # lane-tile aligned gate blocks
    O_pad = _round_up(O, 128)        # lane-dense output stores
    B_pad = _round_up(B, b_tile)     # fill f32 sublanes / MXU rows

    # --- Repack / pad weights: gate blocks (i|f|g|o) each widened to H_pad cols. ---
    def pad_gate_cols(w_t):          # (rows, 4H) -> (rows, 4*H_pad)
        rows = w_t.shape[0]
        out = jnp.zeros((rows, 4 * H_pad), jnp.float32)
        for g in range(4):
            out = out.at[:, g * H_pad:g * H_pad + H].set(
                w_t[:, g * H:(g + 1) * H])
        return out

    wih_t_pad = pad_gate_cols(w_ih.T.astype(jnp.float32))            # (D, 4H_pad)
    whh_t_pad = jnp.zeros((H_pad, 4 * H_pad), jnp.float32)
    whh_t_pad = whh_t_pad.at[:H].set(pad_gate_cols(w_hh.T.astype(jnp.float32)))
    bias_pad = pad_gate_cols((b_ih + b_hh).astype(jnp.float32)[None, :])[0]

    wout_t_pad = jnp.zeros((H_pad, O_pad), jnp.float32).at[:H, :O].set(
        w_out.T.astype(jnp.float32))
    bout_pad = jnp.zeros((1, O_pad), jnp.float32).at[0, :O].set(
        b_out.astype(jnp.float32))

    # bf16 in-kernel matmul weights (f32 accumulation); elementwise math stays f32.
    whh_t_pad = whh_t_pad.astype(matmul_dtype)
    wout_t_pad = wout_t_pad.astype(matmul_dtype)

    # --- Hoisted input projection: one big MXU matmul for all timesteps, bias ---
    # --- folded in once, emitted directly in time-major layout (T, B_pad, 4H). ---
    x_pad = jnp.zeros((B_pad, T, D), jnp.float32).at[:B].set(
        x_btd.astype(jnp.float32))
    gates_x = jnp.einsum("btd,dg->tbg", x_pad, wih_t_pad) + bias_pad

    t_chunk = _pick_t_chunk(T, t_chunk_max)
    n_chunks = T // t_chunk
    n_btiles = B_pad // b_tile

    kernel = functools.partial(_lstm_predictor_kernel,
                               hidden_pad=H_pad, t_chunk=t_chunk)

    out_pad = pl.pallas_call(
        kernel,
        out_shape=jax.ShapeDtypeStruct((B_pad, O_pad), jnp.float32),
        grid_spec=pltpu.PrefetchScalarGridSpec(
            num_scalar_prefetch=0,
            grid=(n_btiles, n_chunks),
            in_specs=[
                pl.BlockSpec((t_chunk, b_tile, 4 * H_pad),
                             lambda b, ck: (ck, b, 0)),                 # gates_x chunk
                pl.BlockSpec((H_pad, 4 * H_pad), lambda b, ck: (0, 0)),  # W_hh^T
                pl.BlockSpec((H_pad, O_pad), lambda b, ck: (0, 0)),      # W_out^T
                pl.BlockSpec((1, O_pad), lambda b, ck: (0, 0)),          # b_out
            ],
            out_specs=pl.BlockSpec((b_tile, O_pad), lambda b, ck: (b, 0)),
            scratch_shapes=[
                pltpu.VMEM((b_tile, H_pad), jnp.float32),   # h carry
                pltpu.VMEM((b_tile, H_pad), jnp.float32),   # c carry
            ],
        ),
        compiler_params=pltpu.CompilerParams(
            dimension_semantics=("parallel", "arbitrary"),   # batch-parallel, time-serial
            vmem_limit_bytes=32 * 1024 * 1024,
        ),
    )(gates_x, whh_t_pad, wout_t_pad, bout_pad)

    return out_pad[:B, :O]


def predictor_reference(x_btd, params):
    """Pure-JAX f32 reference (matches PyTorch LSTM + Linear semantics)."""
    w_ih, w_hh, b_ih, b_hh, w_out, b_out = params
    B, T, D = x_btd.shape
    H = w_hh.shape[1]

    def step(carry, x_t):
        h, c = carry
        gates = x_t @ w_ih.T + h @ w_hh.T + b_ih + b_hh
        i_g = jax.nn.sigmoid(gates[:, 0 * H:1 * H])
        f_g = jax.nn.sigmoid(gates[:, 1 * H:2 * H])
        g_g = jnp.tanh(gates[:, 2 * H:3 * H])
        o_g = jax.nn.sigmoid(gates[:, 3 * H:4 * H])
        c = f_g * c + i_g * g_g
        h = o_g * jnp.tanh(c)
        return (h, c), None

    h0 = jnp.zeros((B, H), jnp.float32)
    c0 = jnp.zeros((B, H), jnp.float32)
    (h_last, _), _ = lax.scan(step, (h0, c0), jnp.transpose(x_btd, (1, 0, 2)))
    return h_last @ w_out.T + b_out


def init_params(key, input_dim, hidden_dim, output_dim):
    """Deterministic synthetic parameters, raw PyTorch shapes & init range."""
    ks = jax.random.split(key, 6)
    bound = 1.0 / math.sqrt(hidden_dim)
    w_ih = jax.random.uniform(ks[0], (4 * hidden_dim, input_dim), jnp.float32, -bound, bound)
    w_hh = jax.random.uniform(ks[1], (4 * hidden_dim, hidden_dim), jnp.float32, -bound, bound)
    b_ih = jax.random.uniform(ks[2], (4 * hidden_dim,), jnp.float32, -bound, bound)
    b_hh = jax.random.uniform(ks[3], (4 * hidden_dim,), jnp.float32, -bound, bound)
    w_out = jax.random.uniform(ks[4], (output_dim, hidden_dim), jnp.float32, -bound, bound)
    b_out = jax.random.uniform(ks[5], (output_dim,), jnp.float32, -bound, bound)
    return (w_ih, w_hh, b_ih, b_hh, w_out, b_out)


if __name__ == "__main__":
    B, T, D, H, O = 2, 8, 4, 32, 8   # batch, seq, inputDim, hiddenDim, outputDim

    key = jax.random.PRNGKey(0)
    k_x, k_p = jax.random.split(key)
    x = jax.random.normal(k_x, (B, T, D), jnp.float32)     # batch_first like PyTorch
    params = init_params(k_p, D, H, O)

    ref = predictor_reference(x, params)

    # f32-weight MXU path: tight check against the f32 reference.
    out_f32 = jax.block_until_ready(
        predictor_forward(x, params, matmul_dtype=jnp.float32))
    assert out_f32.shape == (B, O)
    assert jnp.allclose(out_f32, ref, atol=1e-4, rtol=1e-4), "f32 mismatch vs reference"

    # bf16-weight MXU path (default; 2x MXU throughput on v6e/v7x, half VMEM):
    # looser tolerance due to bf16 matmul inputs (f32 accumulation).
    out_bf16 = jax.block_until_ready(
        predictor_forward(x, params, matmul_dtype=jnp.bfloat16))
    assert out_bf16.shape == (B, O)
    assert jnp.allclose(out_bf16, ref, atol=1e-1, rtol=1e-1), "bf16 mismatch vs reference"

    print("KERNEL_OK")
</pallas_src>

<mosaic_0001>
module attributes {stable_mosaic.version = 11 : i64} {
  func.func @_lstm_predictor_kernel(%arg0: i32, %arg1: i32, %arg2: memref<8x8x512xf32, #tpu.memory_space<vmem>>, %arg3: memref<128x512xf32, #tpu.memory_space<vmem>>, %arg4: memref<128x128xf32, #tpu.memory_space<vmem>>, %arg5: memref<1x128xf32, #tpu.memory_space<vmem>>, %arg6: memref<8x128xf32, #tpu.memory_space<vmem>>, %arg7: memref<8x128xf32, #tpu.memory_space<vmem>>, %arg8: memref<8x128xf32, #tpu.memory_space<vmem>>) attributes {dimension_semantics = [#tpu.dimension_semantics<parallel>, #tpu.dimension_semantics<arbitrary>], iteration_bounds = array<i64: 1, 1>, scalar_prefetch = 0 : i64, scratch_operands = 2 : i64, tpu.core_type = #tpu.core_type<tc>, window_params = [{transform_indices = @transform_0, window_bounds = array<i64: 8, 8, 512>}, {pipeline_mode = #tpu.pipeline_mode<synchronous>, transform_indices = @transform_1, window_bounds = array<i64: 128, 512>}, {pipeline_mode = #tpu.pipeline_mode<synchronous>, transform_indices = @transform_2, window_bounds = array<i64: 128, 128>}, {pipeline_mode = #tpu.pipeline_mode<synchronous>, transform_indices = @transform_3, window_bounds = array<i64: 1, 128>}, {transform_indices = @transform_4, window_bounds = array<i64: 8, 128>}]} {
    %c0_i32 = arith.constant 0 : i32
    %0 = arith.cmpi eq, %arg1, %c0_i32 : i32
    %1 = arith.extui %0 : i1 to i32
    %c0_i32_0 = arith.constant 0 : i32
    %2 = arith.cmpi ne, %1, %c0_i32_0 : i32
    scf.if %2 {
      %cst_60 = arith.constant 0.000000e+00 : f32
      %251 = vector.broadcast %cst_60 : f32 to vector<8x128xf32>
      %c0_61 = arith.constant 0 : index
      %c0_62 = arith.constant 0 : index
      %252 = vector.load %arg7[%c0_61, %c0_62] : memref<8x128xf32, #tpu.memory_space<vmem>>, vector<8x128xf32>
      tpu.vector_store %arg7[%c0_61, %c0_62], %251 {strides = array<i32>} : memref<8x128xf32, #tpu.memory_space<vmem>>, vector<8x128xf32>,
      %cst_63 = arith.constant 0.000000e+00 : f32
      %253 = vector.broadcast %cst_63 : f32 to vector<8x128xf32>
      %c0_64 = arith.constant 0 : index
      %c0_65 = arith.constant 0 : index
      %254 = vector.load %arg8[%c0_64, %c0_65] : memref<8x128xf32, #tpu.memory_space<vmem>>, vector<8x128xf32>
      tpu.vector_store %arg8[%c0_64, %c0_65], %253 {strides = array<i32>} : memref<8x128xf32, #tpu.memory_space<vmem>>, vector<8x128xf32>,
    } else {
    }
    %c0 = arith.constant 0 : index
    %c0_1 = arith.constant 0 : index
    %3 = vector.load %arg3[%c0, %c0_1] : memref<128x512xf32, #tpu.memory_space<vmem>>, vector<128x512xf32>
    %c0_2 = arith.constant 0 : index
    %c0_3 = arith.constant 0 : index
    %4 = vector.load %arg7[%c0_2, %c0_3] : memref<8x128xf32, #tpu.memory_space<vmem>>, vector<8x128xf32>
    %c0_4 = arith.constant 0 : index
    %c0_5 = arith.constant 0 : index
    %5 = vector.load %arg8[%c0_4, %c0_5] : memref<8x128xf32, #tpu.memory_space<vmem>>, vector<8x128xf32>
    %c0_i32_6 = arith.constant 0 : i32
    %6 = arith.index_cast %c0_i32_6 : i32 to index
    %c0_7 = arith.constant 0 : index
    %c0_8 = arith.constant 0 : index
    %7 = vector.load %arg2[%6, %c0_7, %c0_8] : memref<8x8x512xf32, #tpu.memory_space<vmem>>, vector<1x8x512xf32>
    %8 = vector.shape_cast %7 : vector<1x8x512xf32> to vector<8x512xf32>
    %cst = arith.constant dense<0.000000e+00> : vector<8x512xf32>
    %9 = tpu.matmul %4, %3, %cst {dimension_numbers = #tpu.dot_dimension_numbers<[1], [0], [0], [1], [0, 0, 1, 1], [], []>} : vector<8x128xf32>, vector<128x512xf32>, vector<8x512xf32> -> vector<8x512xf32>
    %10 = arith.addf %8, %9 : vector<8x512xf32>
    %11 = vector.extract_strided_slice %10 {offsets = [0, 0], sizes = [8, 128], strides = [1, 1]} : vector<8x512xf32> to vector<8x128xf32>
    %12 = arith.negf %11 : vector<8x128xf32>
    %13 = math.exp %12 : vector<8x128xf32>
    %cst_9 = arith.constant 1.000000e+00 : f32
    %14 = vector.broadcast %cst_9 : f32 to vector<8x128xf32>
    %15 = arith.addf %14, %13 : vector<8x128xf32>
    %16 = arith.divf %14, %15 : vector<8x128xf32>
    %17 = vector.extract_strided_slice %10 {offsets = [0, 128], sizes = [8, 128], strides = [1, 1]} : vector<8x512xf32> to vector<8x128xf32>
    %18 = arith.negf %17 : vector<8x128xf32>
    %19 = math.exp %18 : vector<8x128xf32>
    %cst_10 = arith.constant 1.000000e+00 : f32
    %20 = vector.broadcast %cst_10 : f32 to vector<8x128xf32>
    %21 = arith.addf %20, %19 : vector<8x128xf32>
    %22 = arith.divf %20, %21 : vector<8x128xf32>
    %23 = vector.extract_strided_slice %10 {offsets = [0, 256], sizes = [8, 128], strides = [1, 1]} : vector<8x512xf32> to vector<8x128xf32>
    %24 = math.tanh %23 : vector<8x128xf32>
    %25 = vector.extract_strided_slice %10 {offsets = [0, 384], sizes = [8, 128], strides = [1, 1]} : vector<8x512xf32> to vector<8x128xf32>
    %26 = arith.negf %25 : vector<8x128xf32>
    %27 = math.exp %26 : vector<8x128xf32>
    %cst_11 = arith.constant 1.000000e+00 : f32
    %28 = vector.broadcast %cst_11 : f32 to vector<8x128xf32>
    %29 = arith.addf %28, %27 : vector<8x128xf32>
    %30 = arith.divf %28, %29 : vector<8x128xf32>
    %31 = arith.mulf %22, %5 : vector<8x128xf32>
    %32 = arith.mulf %16, %24 : vector<8x128xf32>
    %33 = arith.addf %31, %32 : vector<8x128xf32>
    %34 = math.tanh %33 : vector<8x128xf32>
    %35 = arith.mulf %30, %34 : vector<8x128xf32>
    %c1_i32 = arith.constant 1 : i32
    %36 = arith.index_cast %c1_i32 : i32 to index
    %c0_12 = arith.constant 0 : index
    %c0_13 = arith.constant 0 : index
    %37 = vector.load %arg2[%36, %c0_12, %c0_13] : memref<8x8x512xf32, #tpu.memory_space<vmem>>, vector<1x8x512xf32>
    %38 = vector.shape_cast %37 : vector<1x8x512xf32> to vector<8x512xf32>
    %cst_14 = arith.constant dense<0.000000e+00> : vector<8x512xf32>
    %39 = tpu.matmul %35, %3, %cst_14 {dimension_numbers = #tpu.dot_dimension_numbers<[1], [0], [0], [1], [0, 0, 1, 1], [], []>} : vector<8x128xf32>, vector<128x512xf32>, vector<8x512xf32> -> vector<8x512xf32>
    %40 = arith.addf %38, %39 : vector<8x512xf32>
    %41 = vector.extract_strided_slice %40 {offsets = [0, 0], sizes = [8, 128], strides = [1, 1]} : vector<8x512xf32> to vector<8x128xf32>
    %42 = arith.negf %41 : vector<8x128xf32>
    %43 = math.exp %42 : vector<8x128xf32>
    %cst_15 = arith.constant 1.000000e+00 : f32
    %44 = vector.broadcast %cst_15 : f32 to vector<8x128xf32>
    %45 = arith.addf %44, %43 : vector<8x128xf32>
    %46 = arith.divf %44, %45 : vector<8x128xf32>
    %47 = vector.extract_strided_slice %40 {offsets = [0, 128], sizes = [8, 128], strides = [1, 1]} : vector<8x512xf32> to vector<8x128xf32>
    %48 = arith.negf %47 : vector<8x128xf32>
    %49 = math.exp %48 : vector<8x128xf32>
    %cst_16 = arith.constant 1.000000e+00 : f32
    %50 = vector.broadcast %cst_16 : f32 to vector<8x128xf32>
    %51 = arith.addf %50, %49 : vector<8x128xf32>
    %52 = arith.divf %50, %51 : vector<8x128xf32>
    %53 = vector.extract_strided_slice %40 {offsets = [0, 256], sizes = [8, 128], strides = [1, 1]} : vector<8x512xf32> to vector<8x128xf32>
    %54 = math.tanh %53 : vector<8x128xf32>
    %55 = vector.extract_strided_slice %40 {offsets = [0, 384], sizes = [8, 128], strides = [1, 1]} : vector<8x512xf32> to vector<8x128xf32>
    %56 = arith.negf %55 : vector<8x128xf32>
    %57 = math.exp %56 : vector<8x128xf32>
    %cst_17 = arith.constant 1.000000e+00 : f32
    %58 = vector.broadcast %cst_17 : f32 to vector<8x128xf32>
    %59 = arith.addf %58, %57 : vector<8x128xf32>
    %60 = arith.divf %58, %59 : vector<8x128xf32>
    %61 = arith.mulf %52, %33 : vector<8x128xf32>
    %62 = arith.mulf %46, %54 : vector<8x128xf32>
    %63 = arith.addf %61, %62 : vector<8x128xf32>
    %64 = math.tanh %63 : vector<8x128xf32>
    %65 = arith.mulf %60, %64 : vector<8x128xf32>
    %c2_i32 = arith.constant 2 : i32
    %66 = arith.index_cast %c2_i32 : i32 to index
    %c0_18 = arith.constant 0 : index
    %c0_19 = arith.constant 0 : index
    %67 = vector.load %arg2[%66, %c0_18, %c0_19] : memref<8x8x512xf32, #tpu.memory_space<vmem>>, vector<1x8x512xf32>
    %68 = vector.shape_cast %67 : vector<1x8x512xf32> to vector<8x512xf32>
    %cst_20 = arith.constant dense<0.000000e+00> : vector<8x512xf32>
    %69 = tpu.matmul %65, %3, %cst_20 {dimension_numbers = #tpu.dot_dimension_numbers<[1], [0], [0], [1], [0, 0, 1, 1], [], []>} : vector<8x128xf32>, vector<128x512xf32>, vector<8x512xf32> -> vector<8x512xf32>
    %70 = arith.addf %68, %69 : vector<8x512xf32>
    %71 = vector.extract_strided_slice %70 {offsets = [0, 0], sizes = [8, 128], strides = [1, 1]} : vector<8x512xf32> to vector<8x128xf32>
    %72 = arith.negf %71 : vector<8x128xf32>
    %73 = math.exp %72 : vector<8x128xf32>
    %cst_21 = arith.constant 1.000000e+00 : f32
    %74 = vector.broadcast %cst_21 : f32 to vector<8x128xf32>
    %75 = arith.addf %74, %73 : vector<8x128xf32>
    %76 = arith.divf %74, %75 : vector<8x128xf32>
    %77 = vector.extract_strided_slice %70 {offsets = [0, 128], sizes = [8, 128], strides = [1, 1]} : vector<8x512xf32> to vector<8x128xf32>
    %78 = arith.negf %77 : vector<8x128xf32>
    %79 = math.exp %78 : vector<8x128xf32>
    %cst_22 = arith.constant 1.000000e+00 : f32
    %80 = vector.broadcast %cst_22 : f32 to vector<8x128xf32>
    %81 = arith.addf %80, %79 : vector<8x128xf32>
    %82 = arith.divf %80, %81 : vector<8x128xf32>
    %83 = vector.extract_strided_slice %70 {offsets = [0, 256], sizes = [8, 128], strides = [1, 1]} : vector<8x512xf32> to vector<8x128xf32>
    %84 = math.tanh %83 : vector<8x128xf32>
    %85 = vector.extract_strided_slice %70 {offsets = [0, 384], sizes = [8, 128], strides = [1, 1]} : vector<8x512xf32> to vector<8x128xf32>
    %86 = arith.negf %85 : vector<8x128xf32>
    %87 = math.exp %86 : vector<8x128xf32>
    %cst_23 = arith.constant 1.000000e+00 : f32
    %88 = vector.broadcast %cst_23 : f32 to vector<8x128xf32>
    %89 = arith.addf %88, %87 : vector<8x128xf32>
    %90 = arith.divf %88, %89 : vector<8x128xf32>
    %91 = arith.mulf %82, %63 : vector<8x128xf32>
    %92 = arith.mulf %76, %84 : vector<8x128xf32>
    %93 = arith.addf %91, %92 : vector<8x128xf32>
    %94 = math.tanh %93 : vector<8x128xf32>
    %95 = arith.mulf %90, %94 : vector<8x128xf32>
    %c3_i32 = arith.constant 3 : i32
    %96 = arith.index_cast %c3_i32 : i32 to index
    %c0_24 = arith.constant 0 : index
    %c0_25 = arith.constant 0 : index
    %97 = vector.load %arg2[%96, %c0_24, %c0_25] : memref<8x8x512xf32, #tpu.memory_space<vmem>>, vector<1x8x512xf32>
    %98 = vector.shape_cast %97 : vector<1x8x512xf32> to vector<8x512xf32>
    %cst_26 = arith.constant dense<0.000000e+00> : vector<8x512xf32>
    %99 = tpu.matmul %95, %3, %cst_26 {dimension_numbers = #tpu.dot_dimension_numbers<[1], [0], [0], [1], [0, 0, 1, 1], [], []>} : vector<8x128xf32>, vector<128x512xf32>, vector<8x512xf32> -> vector<8x512xf32>
    %100 = arith.addf %98, %99 : vector<8x512xf32>
    %101 = vector.extract_strided_slice %100 {offsets = [0, 0], sizes = [8, 128], strides = [1, 1]} : vector<8x512xf32> to vector<8x128xf32>
    %102 = arith.negf %101 : vector<8x128xf32>
    %103 = math.exp %102 : vector<8x128xf32>
    %cst_27 = arith.constant 1.000000e+00 : f32
    %104 = vector.broadcast %cst_27 : f32 to vector<8x128xf32>
    %105 = arith.addf %104, %103 : vector<8x128xf32>
    %106 = arith.divf %104, %105 : vector<8x128xf32>
    %107 = vector.extract_strided_slice %100 {offsets = [0, 128], sizes = [8, 128], strides = [1, 1]} : vector<8x512xf32> to vector<8x128xf32>
    %108 = arith.negf %107 : vector<8x128xf32>
    %109 = math.exp %108 : vector<8x128xf32>
    %cst_28 = arith.constant 1.000000e+00 : f32
    %110 = vector.broadcast %cst_28 : f32 to vector<8x128xf32>
    %111 = arith.addf %110, %109 : vector<8x128xf32>
    %112 = arith.divf %110, %111 : vector<8x128xf32>
    %113 = vector.extract_strided_slice %100 {offsets = [0, 256], sizes = [8, 128], strides = [1, 1]} : vector<8x512xf32> to vector<8x128xf32>
    %114 = math.tanh %113 : vector<8x128xf32>
    %115 = vector.extract_strided_slice %100 {offsets = [0, 384], sizes = [8, 128], strides = [1, 1]} : vector<8x512xf32> to vector<8x128xf32>
    %116 = arith.negf %115 : vector<8x128xf32>
    %117 = math.exp %116 : vector<8x128xf32>
    %cst_29 = arith.constant 1.000000e+00 : f32
    %118 = vector.broadcast %cst_29 : f32 to vector<8x128xf32>
    %119 = arith.addf %118, %117 : vector<8x128xf32>
    %120 = arith.divf %118, %119 : vector<8x128xf32>
    %121 = arith.mulf %112, %93 : vector<8x128xf32>
    %122 = arith.mulf %106, %114 : vector<8x128xf32>
    %123 = arith.addf %121, %122 : vector<8x128xf32>
    %124 = math.tanh %123 : vector<8x128xf32>
    %125 = arith.mulf %120, %124 : vector<8x128xf32>
    %c4_i32 = arith.constant 4 : i32
    %126 = arith.index_cast %c4_i32 : i32 to index
    %c0_30 = arith.constant 0 : index
    %c0_31 = arith.constant 0 : index
    %127 = vector.load %arg2[%126, %c0_30, %c0_31] : memref<8x8x512xf32, #tpu.memory_space<vmem>>, vector<1x8x512xf32>
    %128 = vector.shape_cast %127 : vector<1x8x512xf32> to vector<8x512xf32>
    %cst_32 = arith.constant dense<0.000000e+00> : vector<8x512xf32>
    %129 = tpu.matmul %125, %3, %cst_32 {dimension_numbers = #tpu.dot_dimension_numbers<[1], [0], [0], [1], [0, 0, 1, 1], [], []>} : vector<8x128xf32>, vector<128x512xf32>, vector<8x512xf32> -> vector<8x512xf32>
    %130 = arith.addf %128, %129 : vector<8x512xf32>
    %131 = vector.extract_strided_slice %130 {offsets = [0, 0], sizes = [8, 128], strides = [1, 1]} : vector<8x512xf32> to vector<8x128xf32>
    %132 = arith.negf %131 : vector<8x128xf32>
    %133 = math.exp %132 : vector<8x128xf32>
    %cst_33 = arith.constant 1.000000e+00 : f32
    %134 = vector.broadcast %cst_33 : f32 to vector<8x128xf32>
    %135 = arith.addf %134, %133 : vector<8x128xf32>
    %136 = arith.divf %134, %135 : vector<8x128xf32>
    %137 = vector.extract_strided_slice %130 {offsets = [0, 128], sizes = [8, 128], strides = [1, 1]} : vector<8x512xf32> to vector<8x128xf32>
    %138 = arith.negf %137 : vector<8x128xf32>
    %139 = math.exp %138 : vector<8x128xf32>
    %cst_34 = arith.constant 1.000000e+00 : f32
    %140 = vector.broadcast %cst_34 : f32 to vector<8x128xf32>
    %141 = arith.addf %140, %139 : vector<8x128xf32>
    %142 = arith.divf %140, %141 : vector<8x128xf32>
    %143 = vector.extract_strided_slice %130 {offsets = [0, 256], sizes = [8, 128], strides = [1, 1]} : vector<8x512xf32> to vector<8x128xf32>
    %144 = math.tanh %143 : vector<8x128xf32>
    %145 = vector.extract_strided_slice %130 {offsets = [0, 384], sizes = [8, 128], strides = [1, 1]} : vector<8x512xf32> to vector<8x128xf32>
    %146 = arith.negf %145 : vector<8x128xf32>
    %147 = math.exp %146 : vector<8x128xf32>
    %cst_35 = arith.constant 1.000000e+00 : f32
    %148 = vector.broadcast %cst_35 : f32 to vector<8x128xf32>
    %149 = arith.addf %148, %147 : vector<8x128xf32>
    %150 = arith.divf %148, %149 : vector<8x128xf32>
    %151 = arith.mulf %142, %123 : vector<8x128xf32>
    %152 = arith.mulf %136, %144 : vector<8x128xf32>
    %153 = arith.addf %151, %152 : vector<8x128xf32>
    %154 = math.tanh %153 : vector<8x128xf32>
    %155 = arith.mulf %150, %154 : vector<8x128xf32>
    %c5_i32 = arith.constant 5 : i32
    %156 = arith.index_cast %c5_i32 : i32 to index
    %c0_36 = arith.constant 0 : index
    %c0_37 = arith.constant 0 : index
    %157 = vector.load %arg2[%156, %c0_36, %c0_37] : memref<8x8x512xf32, #tpu.memory_space<vmem>>, vector<1x8x512xf32>
    %158 = vector.shape_cast %157 : vector<1x8x512xf32> to vector<8x512xf32>
    %cst_38 = arith.constant dense<0.000000e+00> : vector<8x512xf32>
    %159 = tpu.matmul %155, %3, %cst_38 {dimension_numbers = #tpu.dot_dimension_numbers<[1], [0], [0], [1], [0, 0, 1, 1], [], []>} : vector<8x128xf32>, vector<128x512xf32>, vector<8x512xf32> -> vector<8x512xf32>
    %160 = arith.addf %158, %159 : vector<8x512xf32>
    %161 = vector.extract_strided_slice %160 {offsets = [0, 0], sizes = [8, 128], strides = [1, 1]} : vector<8x512xf32> to vector<8x128xf32>
    %162 = arith.negf %161 : vector<8x128xf32>
    %163 = math.exp %162 : vector<8x128xf32>
    %cst_39 = arith.constant 1.000000e+00 : f32
    %164 = vector.broadcast %cst_39 : f32 to vector<8x128xf32>
    %165 = arith.addf %164, %163 : vector<8x128xf32>
    %166 = arith.divf %164, %165 : vector<8x128xf32>
    %167 = vector.extract_strided_slice %160 {offsets = [0, 128], sizes = [8, 128], strides = [1, 1]} : vector<8x512xf32> to vector<8x128xf32>
    %168 = arith.negf %167 : vector<8x128xf32>
    %169 = math.exp %168 : vector<8x128xf32>
    %cst_40 = arith.constant 1.000000e+00 : f32
    %170 = vector.broadcast %cst_40 : f32 to vector<8x128xf32>
    %171 = arith.addf %170, %169 : vector<8x128xf32>
    %172 = arith.divf %170, %171 : vector<8x128xf32>
    %173 = vector.extract_strided_slice %160 {offsets = [0, 256], sizes = [8, 128], strides = [1, 1]} : vector<8x512xf32> to vector<8x128xf32>
    %174 = math.tanh %173 : vector<8x128xf32>
    %175 = vector.extract_strided_slice %160 {offsets = [0, 384], sizes = [8, 128], strides = [1, 1]} : vector<8x512xf32> to vector<8x128xf32>
    %176 = arith.negf %175 : vector<8x128xf32>
    %177 = math.exp %176 : vector<8x128xf32>
    %cst_41 = arith.constant 1.000000e+00 : f32
    %178 = vector.broadcast %cst_41 : f32 to vector<8x128xf32>
    %179 = arith.addf %178, %177 : vector<8x128xf32>
    %180 = arith.divf %178, %179 : vector<8x128xf32>
    %181 = arith.mulf %172, %153 : vector<8x128xf32>
    %182 = arith.mulf %166, %174 : vector<8x128xf32>
    %183 = arith.addf %181, %182 : vector<8x128xf32>
    %184 = math.tanh %183 : vector<8x128xf32>
    %185 = arith.mulf %180, %184 : vector<8x128xf32>
    %c6_i32 = arith.constant 6 : i32
    %186 = arith.index_cast %c6_i32 : i32 to index
    %c0_42 = arith.constant 0 : index
    %c0_43 = arith.constant 0 : index
    %187 = vector.load %arg2[%186, %c0_42, %c0_43] : memref<8x8x512xf32, #tpu.memory_space<vmem>>, vector<1x8x512xf32>
    %188 = vector.shape_cast %187 : vector<1x8x512xf32> to vector<8x512xf32>
    %cst_44 = arith.constant dense<0.000000e+00> : vector<8x512xf32>
    %189 = tpu.matmul %185, %3, %cst_44 {dimension_numbers = #tpu.dot_dimension_numbers<[1], [0], [0], [1], [0, 0, 1, 1], [], []>} : vector<8x128xf32>, vector<128x512xf32>, vector<8x512xf32> -> vector<8x512xf32>
    %190 = arith.addf %188, %189 : vector<8x512xf32>
    %191 = vector.extract_strided_slice %190 {offsets = [0, 0], sizes = [8, 128], strides = [1, 1]} : vector<8x512xf32> to vector<8x128xf32>
    %192 = arith.negf %191 : vector<8x128xf32>
    %193 = math.exp %192 : vector<8x128xf32>
    %cst_45 = arith.constant 1.000000e+00 : f32
    %194 = vector.broadcast %cst_45 : f32 to vector<8x128xf32>
    %195 = arith.addf %194, %193 : vector<8x128xf32>
    %196 = arith.divf %194, %195 : vector<8x128xf32>
    %197 = vector.extract_strided_slice %190 {offsets = [0, 128], sizes = [8, 128], strides = [1, 1]} : vector<8x512xf32> to vector<8x128xf32>
    %198 = arith.negf %197 : vector<8x128xf32>
    %199 = math.exp %198 : vector<8x128xf32>
    %cst_46 = arith.constant 1.000000e+00 : f32
    %200 = vector.broadcast %cst_46 : f32 to vector<8x128xf32>
    %201 = arith.addf %200, %199 : vector<8x128xf32>
    %202 = arith.divf %200, %201 : vector<8x128xf32>
    %203 = vector.extract_strided_slice %190 {offsets = [0, 256], sizes = [8, 128], strides = [1, 1]} : vector<8x512xf32> to vector<8x128xf32>
    %204 = math.tanh %203 : vector<8x128xf32>
    %205 = vector.extract_strided_slice %190 {offsets = [0, 384], sizes = [8, 128], strides = [1, 1]} : vector<8x512xf32> to vector<8x128xf32>
    %206 = arith.negf %205 : vector<8x128xf32>
    %207 = math.exp %206 : vector<8x128xf32>
    %cst_47 = arith.constant 1.000000e+00 : f32
    %208 = vector.broadcast %cst_47 : f32 to vector<8x128xf32>
    %209 = arith.addf %208, %207 : vector<8x128xf32>
    %210 = arith.divf %208, %209 : vector<8x128xf32>
    %211 = arith.mulf %202, %183 : vector<8x128xf32>
    %212 = arith.mulf %196, %204 : vector<8x128xf32>
    %213 = arith.addf %211, %212 : vector<8x128xf32>
    %214 = math.tanh %213 : vector<8x128xf32>
    %215 = arith.mulf %210, %214 : vector<8x128xf32>
    %c7_i32 = arith.constant 7 : i32
    %216 = arith.index_cast %c7_i32 : i32 to index
    %c0_48 = arith.constant 0 : index
    %c0_49 = arith.constant 0 : index
    %217 = vector.load %arg2[%216, %c0_48, %c0_49] : memref<8x8x512xf32, #tpu.memory_space<vmem>>, vector<1x8x512xf32>
    %218 = vector.shape_cast %217 : vector<1x8x512xf32> to vector<8x512xf32>
    %cst_50 = arith.constant dense<0.000000e+00> : vector<8x512xf32>
    %219 = tpu.matmul %215, %3, %cst_50 {dimension_numbers = #tpu.dot_dimension_numbers<[1], [0], [0], [1], [0, 0, 1, 1], [], []>} : vector<8x128xf32>, vector<128x512xf32>, vector<8x512xf32> -> vector<8x512xf32>
    %220 = arith.addf %218, %219 : vector<8x512xf32>
    %221 = vector.extract_strided_slice %220 {offsets = [0, 0], sizes = [8, 128], strides = [1, 1]} : vector<8x512xf32> to vector<8x128xf32>
    %222 = arith.negf %221 : vector<8x128xf32>
    %223 = math.exp %222 : vector<8x128xf32>
    %cst_51 = arith.constant 1.000000e+00 : f32
    %224 = vector.broadcast %cst_51 : f32 to vector<8x128xf32>
    %225 = arith.addf %224, %223 : vector<8x128xf32>
    %226 = arith.divf %224, %225 : vector<8x128xf32>
    %227 = vector.extract_strided_slice %220 {offsets = [0, 128], sizes = [8, 128], strides = [1, 1]} : vector<8x512xf32> to vector<8x128xf32>
    %228 = arith.negf %227 : vector<8x128xf32>
    %229 = math.exp %228 : vector<8x128xf32>
    %cst_52 = arith.constant 1.000000e+00 : f32
    %230 = vector.broadcast %cst_52 : f32 to vector<8x128xf32>
    %231 = arith.addf %230, %229 : vector<8x128xf32>
    %232 = arith.divf %230, %231 : vector<8x128xf32>
    %233 = vector.extract_strided_slice %220 {offsets = [0, 256], sizes = [8, 128], strides = [1, 1]} : vector<8x512xf32> to vector<8x128xf32>
    %234 = math.tanh %233 : vector<8x128xf32>
    %235 = vector.extract_strided_slice %220 {offsets = [0, 384], sizes = [8, 128], strides = [1, 1]} : vector<8x512xf32> to vector<8x128xf32>
    %236 = arith.negf %235 : vector<8x128xf32>
    %237 = math.exp %236 : vector<8x128xf32>
    %cst_53 = arith.constant 1.000000e+00 : f32
    %238 = vector.broadcast %cst_53 : f32 to vector<8x128xf32>
    %239 = arith.addf %238, %237 : vector<8x128xf32>
    %240 = arith.divf %238, %239 : vector<8x128xf32>
    %241 = arith.mulf %232, %213 : vector<8x128xf32>
    %242 = arith.mulf %226, %234 : vector<8x128xf32>
    %243 = arith.addf %241, %242 : vector<8x128xf32>
    %244 = math.tanh %243 : vector<8x128xf32>
    %245 = arith.mulf %240, %244 : vector<8x128xf32>
    %c8_i32 = arith.constant 8 : i32
    %c0_54 = arith.constant 0 : index
    %c0_55 = arith.constant 0 : index
    %246 = vector.load %arg7[%c0_54, %c0_55] : memref<8x128xf32, #tpu.memory_space<vmem>>, vector<8x128xf32>
    tpu.vector_store %arg7[%c0_54, %c0_55], %245 {strides = array<i32>} : memref<8x128xf32, #tpu.memory_space<vmem>>, vector<8x128xf32>,
    %c0_56 = arith.constant 0 : index
    %c0_57 = arith.constant 0 : index
    %247 = vector.load %arg8[%c0_56, %c0_57] : memref<8x128xf32, #tpu.memory_space<vmem>>, vector<8x128xf32>
    tpu.vector_store %arg8[%c0_56, %c0_57], %243 {strides = array<i32>} : memref<8x128xf32, #tpu.memory_space<vmem>>, vector<8x128xf32>,
    %c0_i32_58 = arith.constant 0 : i32
    %248 = arith.cmpi eq, %arg1, %c0_i32_58 : i32
    %249 = arith.extui %248 : i1 to i32
    %c0_i32_59 = arith.constant 0 : i32
    %250 = arith.cmpi ne, %249, %c0_i32_59 : i32
    scf.if %250 {
      %c0_60 = arith.constant 0 : index
      %c0_61 = arith.constant 0 : index
      %251 = vector.load %arg4[%c0_60, %c0_61] : memref<128x128xf32, #tpu.memory_space<vmem>>, vector<128x128xf32>
      %cst_62 = arith.constant dense<0.000000e+00> : vector<8x128xf32>
      %252 = tpu.matmul %245, %251, %cst_62 {dimension_numbers = #tpu.dot_dimension_numbers<[1], [0], [0], [1], [0, 0, 1, 1], [], []>} : vector<8x128xf32>, vector<128x128xf32>, vector<8x128xf32> -> vector<8x128xf32>
      %c0_63 = arith.constant 0 : index
      %c0_64 = arith.constant 0 : index
      %253 = vector.load %arg5[%c0_63, %c0_64] : memref<1x128xf32, #tpu.memory_space<vmem>>, vector<1x128xf32>
      %254 = vector.broadcast %253 : vector<1x128xf32> to vector<8x128xf32>
      %255 = arith.addf %252, %254 : vector<8x128xf32>
      %c0_65 = arith.constant 0 : index
      %c0_66 = arith.constant 0 : index
      %256 = vector.load %arg6[%c0_65, %c0_66] : memref<8x128xf32, #tpu.memory_space<vmem>>, vector<8x128xf32>
      tpu.vector_store %arg6[%c0_65, %c0_66], %255 {strides = array<i32>} : memref<8x128xf32, #tpu.memory_space<vmem>>, vector<8x128xf32>,
    } else {
    }
    return
  }
  func.func @transform_0(%arg0: i32, %arg1: i32) -> (i32, i32, i32) {
    %c0_i32 = arith.constant 0 : i32
    %c0_i32_0 = arith.constant 0 : i32
    return %arg1, %arg0, %c0_i32 : i32, i32, i32
  }
  func.func @transform_1(%arg0: i32, %arg1: i32) -> (i32, i32) {
    %c0_i32 = arith.constant 0 : i32
    %c0_i32_0 = arith.constant 0 : i32
    %c0_i32_1 = arith.constant 0 : i32
    return %c0_i32, %c0_i32_0 : i32, i32
  }
  func.func @transform_2(%arg0: i32, %arg1: i32) -> (i32, i32) {
    %c0_i32 = arith.constant 0 : i32
    %c0_i32_0 = arith.constant 0 : i32
    %c0_i32_1 = arith.constant 0 : i32
    return %c0_i32, %c0_i32_0 : i32, i32
  }
  func.func @transform_3(%arg0: i32, %arg1: i32) -> (i32, i32) {
    %c0_i32 = arith.constant 0 : i32
    %c0_i32_0 = arith.constant 0 : i32
    %c0_i32_1 = arith.constant 0 : i32
    return %c0_i32, %c0_i32_0 : i32, i32
  }
  func.func @transform_4(%arg0: i32, %arg1: i32) -> (i32, i32) {
    %c0_i32 = arith.constant 0 : i32
    %c0_i32_0 = arith.constant 0 : i32
    return %arg0, %c0_i32 : i32, i32
  }
}

</mosaic_0001>

<bundles_post_ra>
// kernel: tpu_custom_call.1
= control target key start
LH: loop header
LB: loop body
LE: loop exit
PB: predicated region body
PF: predicated region fallthrough
CT: control target
= control target key end

     0   :  { %9 = vsyncpa [#allocation5], 0  ;;  %s2589_s0 = inlined_call_operand.hbm [shape: f32[8,8,512], index: 0, kind: input, shape index: {}]   ;;  %s2590_s1 = inlined_call_operand.hbm [shape: f32[128,512], index: 1, kind: input, shape index: {}]   ;;  %s2591_s2 = inlined_call_operand.hbm [shape: f32[128,128], index: 2, kind: input, shape index: {}]   ;;  %s2592_s3 = inlined_call_operand.vmem [shape: f32[1,128], index: 3, kind: input, shape index: {}]   ;;  %s2593_s4 = inlined_call_operand.hbm [shape: f32[8,128], index: 4, kind: output, shape index: {}]  }
   0x1   :  { %10 = vsyncpa [#allocation8], 0 }
   0x2   :  { %11 = vsyncpa [#allocation6], 0  ;;  %s29_s17 = sshll.u32 %s2590_s1, 4  ;;  %s1744_s18 = smov [#allocation7]   ;;  %s30_s17 = int_to_ptr.hbm [resolvable:$true] %s29_s17 }
   0x3   :  { %s31_s19 = sshll.u32 %s1744_s18, 4  ;;  %s16_s22 = sshll.u32 %s2589_s0, 4  ;;  %s32_s19 = int_to_ptr.vmem [resolvable:$true] %s31_s19  ;;  %s17_s22 = int_to_ptr.hbm [resolvable:$true] %s16_s22 }
   0x4   :  { %s1745_s23 = smov 512   ;;  %s1746_s24 = smov 32  }
   0x5   :  { %37 = dma.hbm_to_vmem [thread:$0]  %s30_s17, 8192, %s32_s19, [#allocation8], %s1745_s23, %s1745_s23, %s1746_s24  }
   0x6   :  { %s1747_s25 = smov [#allocation4]   ;;  %s42_s29 = sshll.u32 %s2591_s2, 4  ;;  %s43_s29 = int_to_ptr.hbm [resolvable:$true] %s42_s29 }
   0x7   :  { %s18_s26 = sshll.u32 %s1747_s25, 4  ;;  %s1748_s1 = smov [#allocation9]   ;;  %s19_s26 = int_to_ptr.vmem [resolvable:$true] %s18_s26 }
   0x8   :  { %24 = dma.hbm_to_vmem [thread:$0]  %s17_s22, 4096, %s19_s26, [#allocation5], %s1745_s23, %s1745_s23, %s1746_s24  }
   0x9   :  { %s44_s30 = sshll.u32 %s1748_s1, 4  ;;  %s1749_s5 = smov 128   ;;  %s45_s30 = int_to_ptr.vmem [resolvable:$true] %s44_s30 }
   0xa   :  { %s1750_s6 = smov 8  }
   0xb   :  { %50 = dma.hbm_to_vmem [thread:$0]  %s43_s29, 2048, %s45_s30, [#allocation8], %s1749_s5, %s1749_s5, %s1750_s6  }
   0xc   :  { %1738 = dma.done.wait [#allocation5], 4096  }
   0xd   :  { %1739 = vsyncadd [#allocation5], 4294963200 }
   0xe   :  { %1740 = dma.done.wait [#allocation8], 10240  }
   0xf   :  { %1741 = vsyncadd [#allocation8], 4294957056  ;;  %v1787_v0 = vld [vmem:[#allocation7 + $0x1e0] sm:$0xff]  ;;  %v1789_v1 = vld [vmem:[#allocation7 + $0x1e8] sm:$0xff]  ;;  %v1751_v60 = vmov 0.0   ;;  %s1752_s7 = smov [#allocation10]  }
  0x10   :  { %2700 = vst [vmem:[#allocation14_spill] sm:$0xff] %v1787_v0  ;;  %v1791_v2 = vld [vmem:[#allocation7 + $0x1f8] sm:$0xff]  ;;  %141 = vmatpush.msra.mxu0 %v1787_v0  ;;  %161 = vmatpush.msra.mxu1 %v1789_v1  ;;  %v1795_v3 = vld [vmem:[#allocation7 + $0x1c0] sm:$0xff]  ;;  %v1797_v4 = vld [vmem:[#allocation7 + $0x1c8] sm:$0xff]  ;;  %s1403_s8 = sshll.u32 %s1752_s7, 4  ;;  %s1405_s11 = sshll.u32 %s2593_s4, 4  ;;  %s1404_s8 = int_to_ptr.vmem [resolvable:$true] %s1403_s8  ;;  %s1406_s11 = int_to_ptr.hbm [resolvable:$true] %s1405_s11 }
  0x11   :  { %v1799_v5 = vld [vmem:[#allocation7 + $0x1d8] sm:$0xff]  ;;  %201 = vmatpush.msra.mxu3 %v1791_v2  ;;  %v1802_v6 = vld [vmem:[#allocation7 + $0x1a0] sm:$0xff]  ;;  %v1804_v7 = vld [vmem:[#allocation7 + $0x1a8] sm:$0xff] }
  0x12   :  { %142 = vmatpush.msra.mxu0 %v1795_v3  ;;  %162 = vmatpush.msra.mxu1 %v1797_v4  ;;  %v1808_v8 = vld [vmem:[#allocation7 + $0x1b8] sm:$0xff]  ;;  %v1811_v9 = vld [vmem:[#allocation7 + $0x180] sm:$0xff]  ;;  %v1813_v10 = vld [vmem:[#allocation7 + $0x188] sm:$0xff] }
  0x13   :  { %202 = vmatpush.msra.mxu3 %v1799_v5  ;;  %v1817_v11 = vld [vmem:[#allocation7 + $0x198] sm:$0xff]  ;;  %v1820_v12 = vld [vmem:[#allocation7 + $0x160] sm:$0xff]  ;;  %v1822_v13 = vld [vmem:[#allocation7 + $0x168] sm:$0xff] }
  0x14   :  { %143 = vmatpush.msra.mxu0 %v1802_v6  ;;  %163 = vmatpush.msra.mxu1 %v1804_v7  ;;  %v1826_v14 = vld [vmem:[#allocation7 + $0x178] sm:$0xff]  ;;  %v1829_v15 = vld [vmem:[#allocation7 + $0x140] sm:$0xff]  ;;  %v1831_v16 = vld [vmem:[#allocation7 + $0x148] sm:$0xff] }
  0x15   :  { %203 = vmatpush.msra.mxu3 %v1808_v8  ;;  %v1833_v17 = vld [vmem:[#allocation7 + $0x1f0] sm:$0xff]  ;;  %v1837_v18 = vld [vmem:[#allocation7 + $0x158] sm:$0xff]  ;;  %v1842_v20 = vld [vmem:[#allocation7 + $0x120] sm:$0xff] }
  0x16   :  { %144 = vmatpush.msra.mxu0 %v1811_v9  ;;  %164 = vmatpush.msra.mxu1 %v1813_v10  ;;  %v1839_v19 = vld [vmem:[#allocation7 + $0x1d0] sm:$0xff]  ;;  %v1844_v21 = vld [vmem:[#allocation7 + $0x128] sm:$0xff]  ;;  %v1849_v22 = vld [vmem:[#allocation7 + $0x138] sm:$0xff] }
  0x17   :  { %204 = vmatpush.msra.mxu3 %v1817_v11  ;;  %181 = vmatpush.msra.mxu2 %v1833_v17  ;;  %v1851_v23 = vld [vmem:[#allocation7 + $0x1b0] sm:$0xff]  ;;  %v1854_v24 = vld [vmem:[#allocation7 + $0x100] sm:$0xff]  ;;  %v1856_v25 = vld [vmem:[#allocation7 + $0x108] sm:$0xff] }
  0x18   :  { %145 = vmatpush.msra.mxu0 %v1820_v12  ;;  %165 = vmatpush.msra.mxu1 %v1822_v13  ;;  %v1861_v26 = vld [vmem:[#allocation7 + $0x118] sm:$0xff]  ;;  %v1863_v27 = vld [vmem:[#allocation7 + $0x190] sm:$0xff]  ;;  %v1866_v28 = vld [vmem:[#allocation7 + $0xe0] sm:$0xff] }
  0x19   :  { %205 = vmatpush.msra.mxu3 %v1826_v14  ;;  %182 = vmatpush.msra.mxu2 %v1839_v19  ;;  %v1868_v29 = vld [vmem:[#allocation7 + $0xe8] sm:$0xff]  ;;  %v1873_v30 = vld [vmem:[#allocation7 + $0xf8] sm:$0xff]  ;;  %v1875_v31 = vld [vmem:[#allocation7 + $0x170] sm:$0xff] }
  0x1a   :  { %146 = vmatpush.msra.mxu0 %v1829_v15  ;;  %166 = vmatpush.msra.mxu1 %v1831_v16  ;;  %v1878_v32 = vld [vmem:[#allocation7 + $0xc0] sm:$0xff]  ;;  %v1880_v33 = vld [vmem:[#allocation7 + $0xc8] sm:$0xff]  ;;  %v1885_v34 = vld [vmem:[#allocation7 + $0xd8] sm:$0xff] }
  0x1b   :  { %206 = vmatpush.msra.mxu3 %v1837_v18  ;;  %183 = vmatpush.msra.mxu2 %v1851_v23  ;;  %2701 = vst [vmem:[#allocation15_spill] sm:$0xff] %v1885_v34  ;;  %v1887_v35 = vld [vmem:[#allocation7 + $0x150] sm:$0xff]  ;;  %v1890_v36 = vld [vmem:[#allocation7 + $0xa0] sm:$0xff]  ;;  %v1892_v37 = vld [vmem:[#allocation7 + $0xa8] sm:$0xff] }
  0x1c   :  { %147 = vmatpush.msra.mxu0 %v1842_v20  ;;  %167 = vmatpush.msra.mxu1 %v1844_v21  ;;  %2702 = vst [vmem:[#allocation16_spill] sm:$0xff] %v1890_v36  ;;  %v1897_v38 = vld [vmem:[#allocation7 + $0xb8] sm:$0xff]  ;;  %v1899_v39 = vld [vmem:[#allocation7 + $0x130] sm:$0xff]  ;;  %v1902_v40 = vld [vmem:[#allocation7 + $0x80] sm:$0xff] }
  0x1d   :  { %207 = vmatpush.msra.mxu3 %v1849_v22  ;;  %184 = vmatpush.msra.mxu2 %v1863_v27  ;;  %2703 = vst [vmem:[#allocation17_spill] sm:$0xff] %v1892_v37  ;;  %v1904_v41 = vld [vmem:[#allocation7 + $0x88] sm:$0xff]  ;;  %v1909_v42 = vld [vmem:[#allocation7 + $0x98] sm:$0xff]  ;;  %v1911_v43 = vld [vmem:[#allocation7 + $0x110] sm:$0xff] }
  0x1e   :  { %148 = vmatpush.msra.mxu0 %v1854_v24  ;;  %168 = vmatpush.msra.mxu1 %v1856_v25  ;;  %2704 = vst [vmem:[#allocation18_spill] sm:$0xff] %v1897_v38  ;;  %v1914_v44 = vld [vmem:[#allocation7 + $0x60] sm:$0xff]  ;;  %v1916_v45 = vld [vmem:[#allocation7 + $0x68] sm:$0xff]  ;;  %v1921_v46 = vld [vmem:[#allocation7 + $0x78] sm:$0xff] }
  0x1f   :  { %208 = vmatpush.msra.mxu3 %v1861_v26  ;;  %185 = vmatpush.msra.mxu2 %v1875_v31  ;;  %2705 = vst [vmem:[#allocation19_spill] sm:$0xff] %v1902_v40  ;;  %v1923_v47 = vld [vmem:[#allocation7 + $0xf0] sm:$0xff]  ;;  %v1926_v48 = vld [vmem:[#allocation7 + $0x40] sm:$0xff]  ;;  %v1928_v49 = vld [vmem:[#allocation7 + $0x48] sm:$0xff] }
  0x20   :  { %149 = vmatpush.msra.mxu0 %v1866_v28  ;;  %169 = vmatpush.msra.mxu1 %v1868_v29  ;;  %2706 = vst [vmem:[#allocation20_spill] sm:$0xff] %v1904_v41  ;;  %v1933_v50 = vld [vmem:[#allocation7 + $0x58] sm:$0xff]  ;;  %v1935_v51 = vld [vmem:[#allocation7 + $0xd0] sm:$0xff]  ;;  %v1938_v52 = vld [vmem:[#allocation7 + $0x20] sm:$0xff] }
  0x21   :  { %209 = vmatpush.msra.mxu3 %v1873_v30  ;;  %186 = vmatpush.msra.mxu2 %v1887_v35  ;;  %2707 = vst [vmem:[#allocation21_spill] sm:$0xff] %v1909_v42  ;;  %v1940_v53 = vld [vmem:[#allocation7 + $0x28] sm:$0xff]  ;;  %v1945_v54 = vld [vmem:[#allocation7 + $0x38] sm:$0xff]  ;;  %v1947_v55 = vld [vmem:[#allocation7 + $0xb0] sm:$0xff] }
  0x22   :  { %150 = vmatpush.msra.mxu0 %v1878_v32  ;;  %170 = vmatpush.msra.mxu1 %v1880_v33  ;;  %2708 = vst [vmem:[#allocation22_spill] sm:$0xff] %v1914_v44  ;;  %v1950_v56 = vld [vmem:[#allocation7] sm:$0xff]  ;;  %v1952_v57 = vld [vmem:[#allocation7 + $0x8] sm:$0xff]  ;;  %v1957_v58 = vld [vmem:[#allocation7 + $0x18] sm:$0xff] }
  0x23   :  { %210 = vmatpush.msra.mxu3 %v1885_v34  ;;  %2709 = vst [vmem:[#allocation23_spill] sm:$0xff] %v1916_v45  ;;  %187 = vmatpush.msra.mxu2 %v1899_v39  ;;  %v1963_v59 = vld [vmem:[#allocation7 + $0x90] sm:$0xff] }
  0x24   :  { %151 = vmatpush.msra.mxu0 %v1890_v36  ;;  %171 = vmatpush.msra.mxu1 %v1892_v37  ;;  %2710 = vst [vmem:[#allocation24_spill] sm:$0xff] %v1921_v46  ;;  %v1966_v61 = vld [vmem:[#allocation7 + $0x70] sm:$0xff] }
  0x25   :  { %211 = vmatpush.msra.mxu3 %v1897_v38  ;;  %2711 = vst [vmem:[#allocation25_spill] sm:$0xff] %v1926_v48  ;;  %188 = vmatpush.msra.mxu2 %v1911_v43  ;;  %v1970_v62 = vld [vmem:[#allocation7 + $0x50] sm:$0xff] }
  0x26   :  { %152 = vmatpush.msra.mxu0 %v1902_v40  ;;  %172 = vmatpush.msra.mxu1 %v1904_v41  ;;  %2712 = vst [vmem:[#allocation26_spill] sm:$0xff] %v1928_v49  ;;  %v1976_v63 = vld [vmem:[#allocation7 + $0x30] sm:$0xff] }
  0x27   :  { %212 = vmatpush.msra.mxu3 %v1909_v42  ;;  %2713 = vst [vmem:[#allocation27_spill] sm:$0xff] %v1933_v50  ;;  %189 = vmatpush.msra.mxu2 %v1923_v47 }
  0x28   :  { %153 = vmatpush.msra.mxu0 %v1914_v44  ;;  %173 = vmatpush.msra.mxu1 %v1916_v45  ;;  %2714 = vst [vmem:[#allocation28_spill] sm:$0xff] %v1935_v51 }
  0x29   :  { %213 = vmatpush.msra.mxu3 %v1921_v46  ;;  %2715 = vst [vmem:[#allocation29_spill] sm:$0xff] %v1938_v52  ;;  %190 = vmatpush.msra.mxu2 %v1935_v51 }
  0x2a   :  { %2716 = vst [vmem:[#allocation30_spill] sm:$0xff] %v1940_v53  ;;  %154 = vmatpush.msra.mxu0 %v1926_v48  ;;  %174 = vmatpush.msra.mxu1 %v1928_v49 }
  0x2b   :  { %2717 = vst [vmem:[#allocation31_spill] sm:$0xff] %v1945_v54  ;;  %214 = vmatpush.msra.mxu3 %v1933_v50  ;;  %191 = vmatpush.msra.mxu2 %v1947_v55 }
  0x2c   :  { %2718 = vst [vmem:[#allocation32_spill] sm:$0xff] %v1947_v55  ;;  %155 = vmatpush.msra.mxu0 %v1938_v52  ;;  %175 = vmatpush.msra.mxu1 %v1940_v53 }
  0x2d   :  { %2719 = vst [vmem:[#allocation33_spill] sm:$0xff] %v1950_v56  ;;  %215 = vmatpush.msra.mxu3 %v1945_v54  ;;  %192 = vmatpush.msra.mxu2 %v1963_v59 }
  0x2e   :  { %2720 = vst [vmem:[#allocation34_spill] sm:$0xff] %v1952_v57  ;;  %156 = vmatpush.msra.mxu0 %v1950_v56  ;;  %176 = vmatpush.msra.mxu1 %v1952_v57 }
  0x2f   :  { %2721 = vst [vmem:[#allocation35_spill] sm:$0xff] %v1957_v58  ;;  %216 = vmatpush.msra.mxu3 %v1957_v58  ;;  %157 = vmatmul.f32.vlgmr.msra.gmra.mxu0 %v1751_v60 }
  0x30   :  { %2722 = vst [vmem:[#allocation36_spill] sm:$0xff] %v1963_v59  ;;  %177 = vmatmul.f32.vlgmr.msra.gmra.mxu1 %v1751_v60  ;;  %217 = vmatmul.f32.vlgmr.msra.gmra.mxu3 %v1751_v60 }
  0x31   :  { %2723 = vst [vmem:[#allocation37_spill] sm:$0xff] %v1966_v61  ;;  %293 = vmatpush.msrb.mxu0 %v1787_v0  ;;  %313 = vmatpush.msrb.mxu1 %v1789_v1  ;;  %v1982_v0 = vld [vmem:[#allocation7 + $0x10] sm:$0xff] }
  0x32   :  { %2724 = vst [vmem:[#allocation38_spill] sm:$0xff] %v1970_v62  ;;  %353 = vmatpush.msrb.mxu3 %v1791_v2  ;;  %193 = vmatpush.msra.mxu2 %v1966_v61 }
  0x33   :  { %294 = vmatpush.msrb.mxu0 %v1795_v3  ;;  %2725 = vst [vmem:[#allocation39_spill] sm:$0xff] %v1976_v63  ;;  %314 = vmatpush.msrb.mxu1 %v1797_v4 }
  0x34   :  { %354 = vmatpush.msrb.mxu3 %v1799_v5  ;;  %194 = vmatpush.msra.mxu2 %v1970_v62  ;;  %2726 = vst [vmem:[#allocation40_spill] sm:$0xff] %v1982_v0 }
  0x35   :  { %295 = vmatpush.msrb.mxu0 %v1802_v6  ;;  %315 = vmatpush.msrb.mxu1 %v1804_v7 }
  0x36   :  { %355 = vmatpush.msrb.mxu3 %v1808_v8  ;;  %195 = vmatpush.msra.mxu2 %v1976_v63 }
  0x37   :  { %296 = vmatpush.msrb.mxu0 %v1811_v9  ;;  %316 = vmatpush.msrb.mxu1 %v1813_v10 }
  0x38   :  { %356 = vmatpush.msrb.mxu3 %v1817_v11  ;;  %196 = vmatpush.msra.mxu2 %v1982_v0 }
  0x39   :  { %297 = vmatpush.msrb.mxu0 %v1820_v12  ;;  %197 = vmatmul.f32.vlgmr.msra.gmra.mxu2 %v1751_v60  ;;  %v2727_v60 = vld [vmem:[#allocation14_spill] sm:$0xff] }
  0x3a   :  { %317 = vmatpush.msrb.mxu1 %v1822_v13  ;;  %333 = vmatpush.msrb.mxu2 %v1833_v17 }
  0x3b   :  { %357 = vmatpush.msrb.mxu3 %v1826_v14  ;;  %298 = vmatpush.msrb.mxu0 %v1829_v15 }
  0x3c   :  { %318 = vmatpush.msrb.mxu1 %v1831_v16  ;;  %334 = vmatpush.msrb.mxu2 %v1839_v19 }
  0x3d   :  { %358 = vmatpush.msrb.mxu3 %v1837_v18  ;;  %299 = vmatpush.msrb.mxu0 %v1842_v20 }
  0x3e   :  { %319 = vmatpush.msrb.mxu1 %v1844_v21  ;;  %335 = vmatpush.msrb.mxu2 %v1851_v23 }
  0x3f   :  { %359 = vmatpush.msrb.mxu3 %v1849_v22  ;;  %300 = vmatpush.msrb.mxu0 %v1854_v24 }
  0x40   :  { %320 = vmatpush.msrb.mxu1 %v1856_v25  ;;  %336 = vmatpush.msrb.mxu2 %v1863_v27 }
  0x41   :  { %360 = vmatpush.msrb.mxu3 %v1861_v26  ;;  %301 = vmatpush.msrb.mxu0 %v1866_v28 }
  0x42   :  { %321 = vmatpush.msrb.mxu1 %v1868_v29  ;;  %337 = vmatpush.msrb.mxu2 %v1875_v31 }
  0x43   :  { %361 = vmatpush.msrb.mxu3 %v1873_v30  ;;  %302 = vmatpush.msrb.mxu0 %v1878_v32 }
  0x44   :  { %322 = vmatpush.msrb.mxu1 %v1880_v33  ;;  %338 = vmatpush.msrb.mxu2 %v1887_v35 }
  0x45   :  { %362 = vmatpush.msrb.mxu3 %v1885_v34  ;;  %303 = vmatpush.msrb.mxu0 %v1890_v36 }
  0x46   :  { %323 = vmatpush.msrb.mxu1 %v1892_v37  ;;  %339 = vmatpush.msrb.mxu2 %v1899_v39 }
  0x47   :  { %363 = vmatpush.msrb.mxu3 %v1897_v38  ;;  %304 = vmatpush.msrb.mxu0 %v1902_v40 }
  0x48   :  { %324 = vmatpush.msrb.mxu1 %v1904_v41  ;;  %340 = vmatpush.msrb.mxu2 %v1911_v43 }
  0x49   :  { %364 = vmatpush.msrb.mxu3 %v1909_v42  ;;  %305 = vmatpush.msrb.mxu0 %v1914_v44 }
  0x4a   :  { %325 = vmatpush.msrb.mxu1 %v1916_v45  ;;  %341 = vmatpush.msrb.mxu2 %v1923_v47 }
  0x4b   :  { %365 = vmatpush.msrb.mxu3 %v1921_v46  ;;  %306 = vmatpush.msrb.mxu0 %v1926_v48 }
  0x4c   :  { %326 = vmatpush.msrb.mxu1 %v1928_v49  ;;  %342 = vmatpush.msrb.mxu2 %v1935_v51 }
  0x4d   :  { %366 = vmatpush.msrb.mxu3 %v1933_v50  ;;  %307 = vmatpush.msrb.mxu0 %v1938_v52 }
  0x4e   :  { %327 = vmatpush.msrb.mxu1 %v1940_v53  ;;  %343 = vmatpush.msrb.mxu2 %v1947_v55 }
  0x4f   :  { %367 = vmatpush.msrb.mxu3 %v1945_v54  ;;  %308 = vmatpush.msrb.mxu0 %v1950_v56 }
  0x50   :  { %328 = vmatpush.msrb.mxu1 %v1952_v57  ;;  %344 = vmatpush.msrb.mxu2 %v1963_v59 }
  0x51   :  { %368 = vmatpush.msrb.mxu3 %v1957_v58  ;;  %445 = vmatpush.msra.mxu0 %v2727_v60 }
  0x52   :  { %465 = vmatpush.msra.mxu1 %v1789_v1  ;;  %345 = vmatpush.msrb.mxu2 %v1966_v61 }
  0x53   :  { %505 = vmatpush.msra.mxu3 %v1791_v2  ;;  %446 = vmatpush.msra.mxu0 %v1795_v3 }
  0x54   :  { %466 = vmatpush.msra.mxu1 %v1797_v4  ;;  %346 = vmatpush.msrb.mxu2 %v1970_v62 }
  0x55   :  { %506 = vmatpush.msra.mxu3 %v1799_v5  ;;  %447 = vmatpush.msra.mxu0 %v1802_v6 }
  0x56   :  { %467 = vmatpush.msra.mxu1 %v1804_v7  ;;  %347 = vmatpush.msrb.mxu2 %v1976_v63 }
  0x57   :  { %507 = vmatpush.msra.mxu3 %v1808_v8  ;;  %448 = vmatpush.msra.mxu0 %v1811_v9 }
  0x58   :  { %468 = vmatpush.msra.mxu1 %v1813_v10  ;;  %348 = vmatpush.msrb.mxu2 %v1982_v0 }
  0x59   :  { %508 = vmatpush.msra.mxu3 %v1817_v11  ;;  %449 = vmatpush.msra.mxu0 %v1820_v12 }
  0x5a   :  { %485 = vmatpush.msra.mxu2 %v1833_v17  ;;  %469 = vmatpush.msra.mxu1 %v1822_v13 }
  0x5b   :  { %509 = vmatpush.msra.mxu3 %v1826_v14  ;;  %450 = vmatpush.msra.mxu0 %v1829_v15 }
  0x5c   :  { %486 = vmatpush.msra.mxu2 %v1839_v19  ;;  %470 = vmatpush.msra.mxu1 %v1831_v16 }
  0x5d   :  { %510 = vmatpush.msra.mxu3 %v1837_v18  ;;  %451 = vmatpush.msra.mxu0 %v1842_v20 }
  0x5e   :  { %487 = vmatpush.msra.mxu2 %v1851_v23  ;;  %471 = vmatpush.msra.mxu1 %v1844_v21 }
  0x5f   :  { %511 = vmatpush.msra.mxu3 %v1849_v22  ;;  %452 = vmatpush.msra.mxu0 %v1854_v24 }
  0x60   :  { %488 = vmatpush.msra.mxu2 %v1863_v27  ;;  %472 = vmatpush.msra.mxu1 %v1856_v25 }
  0x61   :  { %512 = vmatpush.msra.mxu3 %v1861_v26  ;;  %453 = vmatpush.msra.mxu0 %v1866_v28 }
  0x62   :  { %489 = vmatpush.msra.mxu2 %v1875_v31  ;;  %473 = vmatpush.msra.mxu1 %v1868_v29 }
  0x63   :  { %513 = vmatpush.msra.mxu3 %v1873_v30  ;;  %454 = vmatpush.msra.mxu0 %v1878_v32 }
  0x64   :  { %490 = vmatpush.msra.mxu2 %v1887_v35  ;;  %474 = vmatpush.msra.mxu1 %v1880_v33 }
  0x65   :  { %514 = vmatpush.msra.mxu3 %v1885_v34  ;;  %455 = vmatpush.msra.mxu0 %v1890_v36 }
  0x66   :  { %491 = vmatpush.msra.mxu2 %v1899_v39  ;;  %475 = vmatpush.msra.mxu1 %v1892_v37 }
  0x67   :  { %515 = vmatpush.msra.mxu3 %v1897_v38  ;;  %456 = vmatpush.msra.mxu0 %v1902_v40 }
  0x68   :  { %492 = vmatpush.msra.mxu2 %v1911_v43  ;;  %476 = vmatpush.msra.mxu1 %v1904_v41 }
  0x69   :  { %516 = vmatpush.msra.mxu3 %v1909_v42  ;;  %457 = vmatpush.msra.mxu0 %v1914_v44 }
  0x6a   :  { %493 = vmatpush.msra.mxu2 %v1923_v47  ;;  %477 = vmatpush.msra.mxu1 %v1916_v45 }
  0x6b   :  { %517 = vmatpush.msra.mxu3 %v1921_v46  ;;  %458 = vmatpush.msra.mxu0 %v1926_v48 }
  0x6c   :  { %494 = vmatpush.msra.mxu2 %v1935_v51  ;;  %478 = vmatpush.msra.mxu1 %v1928_v49 }
  0x6d   :  { %518 = vmatpush.msra.mxu3 %v1933_v50  ;;  %459 = vmatpush.msra.mxu0 %v1938_v52  ;;  %v137_v52 = vld [vmem:[#allocation4] sm:$0xff] }
  0x6e   :  { %495 = vmatpush.msra.mxu2 %v1947_v55  ;;  %479 = vmatpush.msra.mxu1 %v1940_v53  ;;  %v138_v53 = vld [vmem:[#allocation4 + $0x8] sm:$0xff] }
  0x6f   :  { %519 = vmatpush.msra.mxu3 %v1945_v54  ;;  %460 = vmatpush.msra.mxu0 %v1950_v56 }
  0x70   :  { %496 = vmatpush.msra.mxu2 %v1963_v59  ;;  %480 = vmatpush.msra.mxu1 %v1952_v57  ;;  %v140_v57 = vld [vmem:[#allocation4 + $0x18] sm:$0xff] }
  0x71   :  { %520 = vmatpush.msra.mxu3 %v1957_v58 }
  0x72   :  { %497 = vmatpush.msra.mxu2 %v1966_v61 }
  0x74   :  { %498 = vmatpush.msra.mxu2 %v1970_v62 }
  0x76   :  { %499 = vmatpush.msra.mxu2 %v1976_v63 }
  0x78   :  { %500 = vmatpush.msra.mxu2 %v1982_v0  ;;  %v139_v0 = vld [vmem:[#allocation4 + $0x10] sm:$0xff] }
  0xac   :  { %v158_v50 = vpop.f32.mrf.mxu0 }
  0xad   :  { %v221_v54 = vadd.f32 %v158_v50, %v137_v52  ;;  %v178_v49 = vpop.f32.mrf.mxu1 }
  0xae   :  { %v222_v48 = vadd.f32 %v178_v49, %v138_v53 }
  0xaf   :  { %v1416_v46 = vmul.f32 -1.442695, %v221_v54 }
  0xb0   :  { %v1417_v56 = vmul.f32 -1.442695, %v222_v48 }
  0xb1   :  { %1450 = vpow2.f32 %v1416_v46 }
  0xb2   :  { %1452 = vpow2.f32 %v1417_v56 }
  0xb3   :  { %v218_v58 = vpop.f32.mrf.mxu3 }
  0xb4   :  { %v224_v45 = vadd.f32 %v218_v58, %v140_v57 }
  0xb6   :  { %v1418_v61 = vmul.f32 -1.442695, %v224_v45 }
  0xb7   :  { %v1451_v44 = vpop.eup %1450 }
  0xb8   :  { %v1453_v62 = vpop.eup %1452  ;;  %v228_v42 = vadd.f32 1.0, %v1451_v44  ;;  %1454 = vpow2.f32 %v1418_v61 }
  0xb9   :  { %v247_v63 = vadd.f32 1.0, %v1453_v62 }
  0xba   :  { %1456 = vrcp.f32 %v228_v42  ;;  %v240_v57 = vand.u32 2147483648, %v228_v42  ;;  %v238_v61 = vand.u32 2147483647, %v228_v42  ;;  %vm234_vm2 = vweird.f32 %v228_v42 }
  0xbb   :  { %1458 = vrcp.f32 %v247_v63  ;;  %v259_v58 = vand.u32 2147483648, %v247_v63  ;;  %v257_v41 = vand.u32 2147483647, %v247_v63  ;;  %vm253_vm3 = vweird.f32 %v247_v63 }
  0xbc   :  { %v198_v59 = vpop.f32.mrf.mxu2  ;;  %vm239_vm5 = vcmp.eq.f32.partialorder %v238_v61, 8.507059e+37  ;;  %v2735_v61 = vld [vmem:[#allocation20_spill] sm:$0xff] }
  0xbd   :  { %v223_v52 = vadd.f32 %v198_v59, %v139_v0  ;;  %vm258_vm7 = vcmp.eq.f32.partialorder %v257_v41, 8.507059e+37 }
  0xbe   :  { %v1455_v50 = vpop.eup %1454 }
  0xbf   :  { %v267_v49 = vadd.f32 1.0, %v1455_v50  ;;  %v241_v50 = vor.u32 1.1754944e-38, %v240_v57 }
  0xc0   :  { %v1457_v53 = vpop.eup %1456 }
  0xc1   :  { %v1459_v48 = vpop.eup %1458  ;;  %v230_v46 = vmul.f32 %v1457_v53, %v228_v42  ;;  %1460 = vrcp.f32 %v267_v49  ;;  %vm235_vm0 = vweird.f32 %v1457_v53  ;;  %vm273_vm9 = vweird.f32 %v267_v49 }
  0xc2   :  { %v249_v54 = vmul.f32 %v1459_v48, %v247_v63  ;;  %1462 = vtanh.f32 %v223_v52  ;;  %vm254_vm1 = vweird.f32 %v1459_v48  ;;  %vm236_vm4 = vmor %vm234_vm2, %vm235_vm0  ;;  %v260_v52 = vor.u32 1.1754944e-38, %v259_v58 }
  0xc3   :  { %v231_v56 = vsub.f32 1.0, %v230_v46  ;;  %vm255_vm6 = vmor %vm253_vm3, %vm254_vm1  ;;  %v279_v63 = vand.u32 2147483648, %v267_v49  ;;  %v277_v57 = vand.u32 2147483647, %v267_v49 }
  0xc4   :  { %v250_v45 = vsub.f32 1.0, %v249_v54 }
  0xc5   :  { %v232_v44 = vmul.f32 %v1457_v53, %v231_v56  ;;  %vm278_vm11 = vcmp.eq.f32.partialorder %v277_v57, 8.507059e+37  ;;  %v2747_v57 = vld [vmem:[#allocation30_spill] sm:$0xff] }
  0xc6   :  { %v251_v62 = vmul.f32 %v1459_v48, %v250_v45 }
  0xc7   :  { %v1461_v40 = vpop.eup %1460  ;;  %v233_v38 = vadd.f32 %v1457_v53, %v232_v44 }
  0xc8   :  { %v1463_v0 = vpop.eup %1462  ;;  %v269_v59 = vmul.f32 %v1461_v40, %v267_v49  ;;  %v252_v55 = vadd.f32 %v1459_v48, %v251_v62  ;;  %vm274_vm8 = vweird.f32 %v1461_v40  ;;  %v2733_v49 = vld [vmem:[#allocation18_spill] sm:$0xff]  ;;  %v2736_v62 = vld [vmem:[#allocation36_spill] sm:$0xff] }
  0xc9   :  { %v237_v46 = vsel %vm236_vm4, %v1457_v53, %v233_v38  ;;  %vm275_vm10 = vmor %vm273_vm9, %vm274_vm8  ;;  %v280_v53 = vor.u32 1.1754944e-38, %v279_v63  ;;  %v2746_v63 = vld [vmem:[#allocation29_spill] sm:$0xff] }
  0xca   :  { %v270_v54 = vsub.f32 1.0, %v269_v59  ;;  %v242_v56 = vsel %vm239_vm5, %v241_v50, %v237_v46  ;;  %v256_v37 = vsel %vm255_vm6, %v1459_v48, %v252_v55  ;;  %v2734_v48 = vld [vmem:[#allocation19_spill] sm:$0xff]  ;;  %v2738_v59 = vld [vmem:[#allocation22_spill] sm:$0xff]  ;;  %v2741_v46 = vld [vmem:[#allocation24_spill] sm:$0xff] }
  0xcb   :  { %v261_v45 = vsel %vm258_vm7, %v260_v52, %v256_v37  ;;  %v284_v36 = vmul.f32 %v1463_v0, %v242_v56  ;;  %v2730_v37 = vld [vmem:[#allocation16_spill] sm:$0xff]  ;;  %v2737_v0 = vld [vmem:[#allocation21_spill] sm:$0xff]  ;;  %v2739_v50 = vld [vmem:[#allocation23_spill] sm:$0xff] }
  0xcc   :  { %v283_v34 = vmul.f32 0.0, %v261_v45  ;;  %v271_v51 = vmul.f32 %v1461_v40, %v270_v54  ;;  %v2740_v52 = vld [vmem:[#allocation37_spill] sm:$0xff]  ;;  %v2743_v56 = vld [vmem:[#allocation26_spill] sm:$0xff] }
  0xcd   :  { %v2742_v54 = vld [vmem:[#allocation25_spill] sm:$0xff]  ;;  %v2744_v45 = vld [vmem:[#allocation38_spill] sm:$0xff] }
  0xce   :  { %v2107_v44 = vadd.f32 %v284_v36, %v283_v34  ;;  %v272_v42 = vadd.f32 %v1461_v40, %v271_v51  ;;  %v2728_v34 = vld [vmem:[#allocation28_spill] sm:$0xff]  ;;  %v2729_v36 = vld [vmem:[#allocation15_spill] sm:$0xff] }
  0xcf   :  { %v2732_v51 = vld [vmem:[#allocation32_spill] sm:$0xff] }
  0xd0   :  { %1464 = vtanh.f32 %v2107_v44  ;;  %v276_v38 = vsel %vm275_vm10, %v1461_v40, %v272_v42  ;;  %v2731_v40 = vld [vmem:[#allocation17_spill] sm:$0xff]  ;;  %v2745_v42 = vld [vmem:[#allocation27_spill] sm:$0xff] }
  0xd1   :  { %v281_v55 = vsel %vm278_vm11, %v280_v53, %v276_v38  ;;  %v2748_v38 = vld [vmem:[#allocation39_spill] sm:$0xff] }
  0xd2   :  { %v2749_v53 = vld [vmem:[#allocation31_spill] sm:$0xff] }
  0xd6   :  { %v1465_v58 = vpop.eup %1464 }
  0xd7   :  { %v287_v41 = vmul.f32 %v1465_v58, %v281_v55  ;;  %v2750_v58 = vld [vmem:[#allocation33_spill] sm:$0xff]  ;;  %v2751_v55 = vld [vmem:[#allocation34_spill] sm:$0xff] }
  0xd9   :  { %309 = vmatmul.f32.vlgmr.msrb.gmra.mxu0 %v287_v41  ;;  %329 = vmatmul.f32.vlgmr.msrb.gmra.mxu1 %v287_v41 }
  0xda   :  { %349 = vmatmul.f32.vlgmr.msrb.gmra.mxu2 %v287_v41  ;;  %369 = vmatmul.f32.vlgmr.msrb.gmra.mxu3 %v287_v41  ;;  %v2752_v41 = vld [vmem:[#allocation40_spill] sm:$0xff] }
  0xdb   :  { %597 = vmatpush.msrb.mxu0 %v2727_v60  ;;  %617 = vmatpush.msrb.mxu1 %v1789_v1 }
  0xdc   :  { %637 = vmatpush.msrb.mxu2 %v1833_v17  ;;  %657 = vmatpush.msrb.mxu3 %v1791_v2 }
  0xdd   :  { %598 = vmatpush.msrb.mxu0 %v1795_v3  ;;  %618 = vmatpush.msrb.mxu1 %v1797_v4 }
  0xde   :  { %638 = vmatpush.msrb.mxu2 %v1839_v19  ;;  %658 = vmatpush.msrb.mxu3 %v1799_v5 }
  0xdf   :  { %599 = vmatpush.msrb.mxu0 %v1802_v6  ;;  %619 = vmatpush.msrb.mxu1 %v1804_v7 }
  0xe0   :  { %639 = vmatpush.msrb.mxu2 %v1851_v23  ;;  %659 = vmatpush.msrb.mxu3 %v1808_v8 }
  0xe1   :  { %600 = vmatpush.msrb.mxu0 %v1811_v9  ;;  %620 = vmatpush.msrb.mxu1 %v1813_v10 }
  0xe2   :  { %640 = vmatpush.msrb.mxu2 %v1863_v27  ;;  %660 = vmatpush.msrb.mxu3 %v1817_v11 }
  0xe3   :  { %601 = vmatpush.msrb.mxu0 %v1820_v12  ;;  %621 = vmatpush.msrb.mxu1 %v1822_v13 }
  0xe4   :  { %641 = vmatpush.msrb.mxu2 %v1875_v31  ;;  %661 = vmatpush.msrb.mxu3 %v1826_v14 }
  0xe5   :  { %602 = vmatpush.msrb.mxu0 %v1829_v15  ;;  %622 = vmatpush.msrb.mxu1 %v1831_v16 }
  0xe6   :  { %642 = vmatpush.msrb.mxu2 %v1887_v35  ;;  %662 = vmatpush.msrb.mxu3 %v1837_v18 }
  0xe7   :  { %603 = vmatpush.msrb.mxu0 %v1842_v20  ;;  %623 = vmatpush.msrb.mxu1 %v1844_v21 }
  0xe8   :  { %643 = vmatpush.msrb.mxu2 %v1899_v39  ;;  %663 = vmatpush.msrb.mxu3 %v1849_v22 }
  0xe9   :  { %604 = vmatpush.msrb.mxu0 %v1854_v24  ;;  %624 = vmatpush.msrb.mxu1 %v1856_v25 }
  0xea   :  { %644 = vmatpush.msrb.mxu2 %v1911_v43  ;;  %664 = vmatpush.msrb.mxu3 %v1861_v26 }
  0xeb   :  { %605 = vmatpush.msrb.mxu0 %v1866_v28  ;;  %625 = vmatpush.msrb.mxu1 %v1868_v29 }
  0xec   :  { %645 = vmatpush.msrb.mxu2 %v1923_v47  ;;  %665 = vmatpush.msrb.mxu3 %v1873_v30 }
  0xed   :  { %606 = vmatpush.msrb.mxu0 %v1878_v32  ;;  %626 = vmatpush.msrb.mxu1 %v1880_v33 }
  0xee   :  { %646 = vmatpush.msrb.mxu2 %v2728_v34  ;;  %666 = vmatpush.msrb.mxu3 %v2729_v36 }
  0xef   :  { %607 = vmatpush.msrb.mxu0 %v2730_v37  ;;  %627 = vmatpush.msrb.mxu1 %v2731_v40 }
  0xf0   :  { %647 = vmatpush.msrb.mxu2 %v2732_v51  ;;  %667 = vmatpush.msrb.mxu3 %v2733_v49 }
  0xf1   :  { %608 = vmatpush.msrb.mxu0 %v2734_v48  ;;  %628 = vmatpush.msrb.mxu1 %v2735_v61 }
  0xf2   :  { %648 = vmatpush.msrb.mxu2 %v2736_v62  ;;  %668 = vmatpush.msrb.mxu3 %v2737_v0 }
  0xf3   :  { %609 = vmatpush.msrb.mxu0 %v2738_v59  ;;  %629 = vmatpush.msrb.mxu1 %v2739_v50 }
  0xf4   :  { %649 = vmatpush.msrb.mxu2 %v2740_v52  ;;  %669 = vmatpush.msrb.mxu3 %v2741_v46 }
  0xf5   :  { %610 = vmatpush.msrb.mxu0 %v2742_v54  ;;  %630 = vmatpush.msrb.mxu1 %v2743_v56  ;;  %v2753_v54 = vld [vmem:[#allocation35_spill] sm:$0xff]  ;;  %v289_v56 = vld [vmem:[#allocation4 + $0x20] sm:$0xff] }
  0xf6   :  { %650 = vmatpush.msrb.mxu2 %v2744_v45  ;;  %670 = vmatpush.msrb.mxu3 %v2745_v42  ;;  %v290_v45 = vld [vmem:[#allocation4 + $0x28] sm:$0xff] }
  0xf7   :  { %611 = vmatpush.msrb.mxu0 %v2746_v63  ;;  %631 = vmatpush.msrb.mxu1 %v2747_v57 }
  0xf8   :  { %651 = vmatpush.msrb.mxu2 %v2748_v38  ;;  %671 = vmatpush.msrb.mxu3 %v2749_v53  ;;  %v292_v38 = vld [vmem:[#allocation4 + $0x38] sm:$0xff] }
  0xf9   :  { %612 = vmatpush.msrb.mxu0 %v2750_v58  ;;  %632 = vmatpush.msrb.mxu1 %v2751_v55 }
  0xfa   :  { %652 = vmatpush.msrb.mxu2 %v2752_v41  ;;  %672 = vmatpush.msrb.mxu3 %v2753_v54  ;;  %v291_v54 = vld [vmem:[#allocation4 + $0x30] sm:$0xff] }
 0x156   :  { %v310_v46 = vpop.f32.mrf.mxu0  ;;  %v330_v42 = vpop.f32.mrf.mxu1 }
 0x157   :  { %v373_v52 = vadd.f32 %v310_v46, %v289_v56  ;;  %v374_v63 = vadd.f32 %v330_v42, %v290_v45 }
 0x159   :  { %v1419_v50 = vmul.f32 -1.442695, %v373_v52  ;;  %v1420_v57 = vmul.f32 -1.442695, %v374_v63 }
 0x15b   :  { %1466 = vpow2.f32 %v1419_v50 }
 0x15c   :  { %1468 = vpow2.f32 %v1420_v57 }
 0x15d   :  { %v370_v53 = vpop.f32.mrf.mxu3  ;;  %v350_v61 = vpop.f32.mrf.mxu2 }
 0x15e   :  { %v376_v59 = vadd.f32 %v370_v53, %v292_v38  ;;  %v375_v52 = vadd.f32 %v350_v61, %v291_v54 }
 0x160   :  { %v1421_v58 = vmul.f32 -1.442695, %v376_v59 }
 0x161   :  { %v1467_v0 = vpop.eup %1466 }
 0x162   :  { %v1469_v55 = vpop.eup %1468  ;;  %v380_v62 = vadd.f32 1.0, %v1467_v0  ;;  %1470 = vpow2.f32 %v1421_v58 }
 0x163   :  { %v399_v41 = vadd.f32 1.0, %v1469_v55 }
 0x164   :  { %1472 = vrcp.f32 %v380_v62  ;;  %v392_v59 = vand.u32 2147483648, %v380_v62  ;;  %v390_v53 = vand.u32 2147483647, %v380_v62  ;;  %vm386_vm14 = vweird.f32 %v380_v62 }
 0x165   :  { %1474 = vrcp.f32 %v399_v41  ;;  %v411_v38 = vand.u32 2147483648, %v399_v41  ;;  %v409_v55 = vand.u32 2147483647, %v399_v41  ;;  %vm405_vm15 = vweird.f32 %v399_v41 }
 0x166   :  { %vm391_vm2 = vcmp.eq.f32.partialorder %v390_v53, 8.507059e+37 }
 0x167   :  { %vm410_vm3 = vcmp.eq.f32.partialorder %v409_v55, 8.507059e+37 }
 0x168   :  { %v1471_v48 = vpop.eup %1470 }
 0x169   :  { %v419_v46 = vadd.f32 1.0, %v1471_v48  ;;  %v393_v48 = vor.u32 1.1754944e-38, %v392_v59 }
 0x16a   :  { %v1473_v56 = vpop.eup %1472 }
 0x16b   :  { %v1475_v45 = vpop.eup %1474  ;;  %v382_v50 = vmul.f32 %v1473_v56, %v380_v62  ;;  %1476 = vrcp.f32 %v419_v46  ;;  %vm387_vm12 = vweird.f32 %v1473_v56  ;;  %v431_v59 = vand.u32 2147483648, %v419_v46 }
 0x16c   :  { %v401_v42 = vmul.f32 %v1475_v45, %v399_v41  ;;  %1478 = vtanh.f32 %v375_v52  ;;  %vm406_vm13 = vweird.f32 %v1475_v45  ;;  %vm388_vm0 = vmor %vm386_vm14, %vm387_vm12  ;;  %vm425_vm5 = vweird.f32 %v419_v46 }
 0x16d   :  { %v383_v63 = vsub.f32 1.0, %v382_v50  ;;  %vm407_vm1 = vmor %vm405_vm15, %vm406_vm13  ;;  %v412_v50 = vor.u32 1.1754944e-38, %v411_v38  ;;  %v432_v38 = vor.u32 1.1754944e-38, %v431_v59 }
 0x16e   :  { %v402_v57 = vsub.f32 1.0, %v401_v42 }
 0x16f   :  { %v384_v0 = vmul.f32 %v1473_v56, %v383_v63 }
 0x170   :  { %v403_v58 = vmul.f32 %v1475_v45, %v402_v57 }
 0x171   :  { %v1477_v49 = vpop.eup %1476  ;;  %v385_v51 = vadd.f32 %v1473_v56, %v384_v0 }
 0x172   :  { %v404_v61 = vadd.f32 %v1475_v45, %v403_v58  ;;  %v421_v54 = vmul.f32 %v1477_v49, %v419_v46  ;;  %v1479_v52 = vpop.eup %1478  ;;  %vm426_vm4 = vweird.f32 %v1477_v49 }
 0x173   :  { %v389_v42 = vsel %vm388_vm0, %v1473_v56, %v385_v51  ;;  %v429_v51 = vand.u32 2147483647, %v419_v46  ;;  %vm427_vm6 = vmor %vm425_vm5, %vm426_vm4 }
 0x174   :  { %v394_v40 = vsel %vm391_vm2, %v393_v48, %v389_v42  ;;  %v408_v63 = vsel %vm407_vm1, %v1475_v45, %v404_v61  ;;  %v422_v37 = vsub.f32 1.0, %v421_v54 }
 0x175   :  { %v413_v57 = vsel %vm410_vm3, %v412_v50, %v408_v63  ;;  %v436_v36 = vmul.f32 %v1479_v52, %v394_v40  ;;  %vm430_vm7 = vcmp.eq.f32.partialorder %v429_v51, 8.507059e+37  ;;  %v443_v40 = vld [vmem:[#allocation4 + $0x50] sm:$0xff] }
 0x176   :  { %v435_v34 = vmul.f32 %v413_v57, %v2107_v44  ;;  %v423_v0 = vmul.f32 %v1477_v49, %v422_v37 }
 0x178   :  { %v2175_v62 = vadd.f32 %v436_v36, %v435_v34  ;;  %v424_v41 = vadd.f32 %v1477_v49, %v423_v0 }
 0x17a   :  { %1480 = vtanh.f32 %v2175_v62  ;;  %v428_v56 = vsel %vm427_vm6, %v1477_v49, %v424_v41 }
 0x17b   :  { %v433_v53 = vsel %vm430_vm7, %v432_v38, %v428_v56 }
 0x180   :  { %v1481_v45 = vpop.eup %1480 }
 0x181   :  { %v439_v58 = vmul.f32 %v1481_v45, %v433_v53 }
 0x183   :  { %461 = vmatmul.f32.vlgmr.msra.gmra.mxu0 %v439_v58  ;;  %481 = vmatmul.f32.vlgmr.msra.gmra.mxu1 %v439_v58 }
 0x184   :  { %501 = vmatmul.f32.vlgmr.msra.gmra.mxu2 %v439_v58  ;;  %521 = vmatmul.f32.vlgmr.msra.gmra.mxu3 %v439_v58 }
 0x185   :  { %749 = vmatpush.msra.mxu0 %v2727_v60  ;;  %769 = vmatpush.msra.mxu1 %v1789_v1  ;;  %v2754_v1 = vld [vmem:[#allocation28_spill] sm:$0xff] }
 0x186   :  { %789 = vmatpush.msra.mxu2 %v1833_v17  ;;  %809 = vmatpush.msra.mxu3 %v1791_v2  ;;  %v2755_v2 = vld [vmem:[#allocation15_spill] sm:$0xff]  ;;  %v2770_v17 = vld [vmem:[#allocation38_spill] sm:$0xff] }
 0x187   :  { %750 = vmatpush.msra.mxu0 %v1795_v3  ;;  %770 = vmatpush.msra.mxu1 %v1797_v4  ;;  %v2756_v3 = vld [vmem:[#allocation16_spill] sm:$0xff]  ;;  %v2757_v4 = vld [vmem:[#allocation17_spill] sm:$0xff] }
 0x188   :  { %790 = vmatpush.msra.mxu2 %v1839_v19  ;;  %810 = vmatpush.msra.mxu3 %v1799_v5  ;;  %v2758_v5 = vld [vmem:[#allocation32_spill] sm:$0xff]  ;;  %v2772_v19 = vld [vmem:[#allocation29_spill] sm:$0xff] }
 0x189   :  { %751 = vmatpush.msra.mxu0 %v1802_v6  ;;  %771 = vmatpush.msra.mxu1 %v1804_v7  ;;  %v2759_v6 = vld [vmem:[#allocation18_spill] sm:$0xff]  ;;  %v2760_v7 = vld [vmem:[#allocation19_spill] sm:$0xff] }
 0x18a   :  { %791 = vmatpush.msra.mxu2 %v1851_v23  ;;  %811 = vmatpush.msra.mxu3 %v1808_v8  ;;  %v2761_v8 = vld [vmem:[#allocation20_spill] sm:$0xff]  ;;  %v2776_v23 = vld [vmem:[#allocation33_spill] sm:$0xff] }
 0x18b   :  { %752 = vmatpush.msra.mxu0 %v1811_v9  ;;  %772 = vmatpush.msra.mxu1 %v1813_v10  ;;  %v2762_v9 = vld [vmem:[#allocation36_spill] sm:$0xff]  ;;  %v2763_v10 = vld [vmem:[#allocation21_spill] sm:$0xff] }
 0x18c   :  { %792 = vmatpush.msra.mxu2 %v1863_v27  ;;  %812 = vmatpush.msra.mxu3 %v1817_v11  ;;  %v2764_v11 = vld [vmem:[#allocation22_spill] sm:$0xff]  ;;  %v441_v27 = vld [vmem:[#allocation4 + $0x40] sm:$0xff] }
 0x18d   :  { %753 = vmatpush.msra.mxu0 %v1820_v12  ;;  %773 = vmatpush.msra.mxu1 %v1822_v13  ;;  %v2765_v12 = vld [vmem:[#allocation23_spill] sm:$0xff]  ;;  %v2766_v13 = vld [vmem:[#allocation37_spill] sm:$0xff] }
 0x18e   :  { %793 = vmatpush.msra.mxu2 %v1875_v31  ;;  %813 = vmatpush.msra.mxu3 %v1826_v14  ;;  %v2767_v14 = vld [vmem:[#allocation24_spill] sm:$0xff] }
 0x18f   :  { %754 = vmatpush.msra.mxu0 %v1829_v15  ;;  %774 = vmatpush.msra.mxu1 %v1831_v16  ;;  %v2768_v15 = vld [vmem:[#allocation25_spill] sm:$0xff]  ;;  %v2769_v16 = vld [vmem:[#allocation26_spill] sm:$0xff] }
 0x190   :  { %794 = vmatpush.msra.mxu2 %v1887_v35  ;;  %814 = vmatpush.msra.mxu3 %v1837_v18  ;;  %v2771_v18 = vld [vmem:[#allocation27_spill] sm:$0xff] }
 0x191   :  { %755 = vmatpush.msra.mxu0 %v1842_v20  ;;  %775 = vmatpush.msra.mxu1 %v1844_v21  ;;  %v2773_v20 = vld [vmem:[#allocation30_spill] sm:$0xff]  ;;  %v2774_v21 = vld [vmem:[#allocation39_spill] sm:$0xff] }
 0x192   :  { %795 = vmatpush.msra.mxu2 %v1899_v39  ;;  %815 = vmatpush.msra.mxu3 %v1849_v22  ;;  %v2775_v22 = vld [vmem:[#allocation31_spill] sm:$0xff]  ;;  %v444_v39 = vld [vmem:[#allocation4 + $0x58] sm:$0xff] }
 0x193   :  { %756 = vmatpush.msra.mxu0 %v1854_v24  ;;  %776 = vmatpush.msra.mxu1 %v1856_v25  ;;  %v2777_v24 = vld [vmem:[#allocation34_spill] sm:$0xff]  ;;  %v2778_v25 = vld [vmem:[#allocation40_spill] sm:$0xff] }
 0x194   :  { %796 = vmatpush.msra.mxu2 %v1911_v43  ;;  %816 = vmatpush.msra.mxu3 %v1861_v26  ;;  %v2779_v26 = vld [vmem:[#allocation35_spill] sm:$0xff] }
 0x195   :  { %757 = vmatpush.msra.mxu0 %v1866_v28  ;;  %777 = vmatpush.msra.mxu1 %v1868_v29  ;;  %v442_v28 = vld [vmem:[#allocation4 + $0x48] sm:$0xff] }
 0x196   :  { %797 = vmatpush.msra.mxu2 %v1923_v47  ;;  %817 = vmatpush.msra.mxu3 %v1873_v30 }
 0x197   :  { %758 = vmatpush.msra.mxu0 %v1878_v32  ;;  %778 = vmatpush.msra.mxu1 %v1880_v33 }
 0x198   :  { %798 = vmatpush.msra.mxu2 %v2754_v1  ;;  %818 = vmatpush.msra.mxu3 %v2755_v2 }
 0x199   :  { %759 = vmatpush.msra.mxu0 %v2756_v3  ;;  %779 = vmatpush.msra.mxu1 %v2757_v4 }
 0x19a   :  { %799 = vmatpush.msra.mxu2 %v2758_v5  ;;  %819 = vmatpush.msra.mxu3 %v2759_v6 }
 0x19b   :  { %760 = vmatpush.msra.mxu0 %v2760_v7  ;;  %780 = vmatpush.msra.mxu1 %v2761_v8 }
 0x19c   :  { %800 = vmatpush.msra.mxu2 %v2762_v9  ;;  %820 = vmatpush.msra.mxu3 %v2763_v10 }
 0x19d   :  { %761 = vmatpush.msra.mxu0 %v2764_v11  ;;  %781 = vmatpush.msra.mxu1 %v2765_v12 }
 0x19e   :  { %801 = vmatpush.msra.mxu2 %v2766_v13  ;;  %821 = vmatpush.msra.mxu3 %v2767_v14 }
 0x19f   :  { %762 = vmatpush.msra.mxu0 %v2768_v15  ;;  %782 = vmatpush.msra.mxu1 %v2769_v16 }
 0x1a0   :  { %802 = vmatpush.msra.mxu2 %v2770_v17  ;;  %822 = vmatpush.msra.mxu3 %v2771_v18 }
 0x1a1   :  { %763 = vmatpush.msra.mxu0 %v2772_v19  ;;  %783 = vmatpush.msra.mxu1 %v2773_v20 }
 0x1a2   :  { %803 = vmatpush.msra.mxu2 %v2774_v21  ;;  %823 = vmatpush.msra.mxu3 %v2775_v22  ;;  %v2249_v21 = vld [vmem:[#allocation7 + $0x1e8] sm:$0xff]  ;;  %v2252_v22 = vld [vmem:[#allocation7 + $0x1f0] sm:$0xff] }
 0x1a3   :  { %764 = vmatpush.msra.mxu0 %v2776_v23  ;;  %784 = vmatpush.msra.mxu1 %v2777_v24  ;;  %v2255_v23 = vld [vmem:[#allocation7 + $0x1f8] sm:$0xff]  ;;  %v2258_v24 = vld [vmem:[#allocation7 + $0x1c0] sm:$0xff] }
 0x1a4   :  { %804 = vmatpush.msra.mxu2 %v2778_v25  ;;  %824 = vmatpush.msra.mxu3 %v2779_v26  ;;  %v2261_v25 = vld [vmem:[#allocation7 + $0x1c8] sm:$0xff]  ;;  %v2264_v26 = vld [vmem:[#allocation7 + $0x1d0] sm:$0xff] }
 0x200   :  { %v462_v29 = vpop.f32.mrf.mxu0  ;;  %v482_v30 = vpop.f32.mrf.mxu1 }
 0x201   :  { %v525_v31 = vadd.f32 %v462_v29, %v441_v27  ;;  %v526_v32 = vadd.f32 %v482_v30, %v442_v28  ;;  %v2267_v27 = vld [vmem:[#allocation7 + $0x1d8] sm:$0xff]  ;;  %v2270_v28 = vld [vmem:[#allocation7 + $0x1a0] sm:$0xff]  ;;  %v2273_v29 = vld [vmem:[#allocation7 + $0x1a8] sm:$0xff] }
 0x202   :  { %v2276_v30 = vld [vmem:[#allocation7 + $0x1b0] sm:$0xff] }
 0x203   :  { %v1422_v33 = vmul.f32 -1.442695, %v525_v31  ;;  %v1423_v35 = vmul.f32 -1.442695, %v526_v32  ;;  %v2279_v31 = vld [vmem:[#allocation7 + $0x1b8] sm:$0xff]  ;;  %v2282_v32 = vld [vmem:[#allocation7 + $0x180] sm:$0xff] }
 0x205   :  { %1482 = vpow2.f32 %v1422_v33  ;;  %v2285_v33 = vld [vmem:[#allocation7 + $0x188] sm:$0xff] }
 0x206   :  { %1484 = vpow2.f32 %v1423_v35  ;;  %v2288_v35 = vld [vmem:[#allocation7 + $0x190] sm:$0xff] }
 0x207   :  { %v522_v43 = vpop.f32.mrf.mxu3  ;;  %v502_v49 = vpop.f32.mrf.mxu2 }
 0x208   :  { %v528_v47 = vadd.f32 %v522_v43, %v444_v39  ;;  %v527_v61 = vadd.f32 %v502_v49, %v443_v40  ;;  %v2291_v39 = vld [vmem:[#allocation7 + $0x198] sm:$0xff]  ;;  %v2294_v43 = vld [vmem:[#allocation7 + $0x160] sm:$0xff] }
 0x209   :  { %v2315_v40 = vld [vmem:[#allocation7 + $0x158] sm:$0xff]  ;;  %v2318_v49 = vld [vmem:[#allocation7 + $0x120] sm:$0xff] }
 0x20a   :  { %v1424_v60 = vmul.f32 -1.442695, %v528_v47  ;;  %v2297_v47 = vld [vmem:[#allocation7 + $0x168] sm:$0xff] }
 0x20b   :  { %v1483_v44 = vpop.eup %1482 }
 0x20c   :  { %v1485_v34 = vpop.eup %1484  ;;  %v532_v36 = vadd.f32 1.0, %v1483_v44  ;;  %1486 = vpow2.f32 %v1424_v60  ;;  %v2300_v60 = vld [vmem:[#allocation7 + $0x170] sm:$0xff]  ;;  %v2303_v44 = vld [vmem:[#allocation7 + $0x178] sm:$0xff] }
 0x20d   :  { %v551_v37 = vadd.f32 1.0, %v1485_v34  ;;  %v2306_v34 = vld [vmem:[#allocation7 + $0x140] sm:$0xff] }
 0x20e   :  { %1488 = vrcp.f32 %v532_v36  ;;  %v544_v57 = vand.u32 2147483648, %v532_v36  ;;  %v542_v59 = vand.u32 2147483647, %v532_v36  ;;  %vm538_vm10 = vweird.f32 %v532_v36 }
 0x20f   :  { %1490 = vrcp.f32 %v551_v37  ;;  %v563_v0 = vand.u32 2147483648, %v551_v37  ;;  %v561_v56 = vand.u32 2147483647, %v551_v37  ;;  %vm557_vm11 = vweird.f32 %v551_v37 }
 0x210   :  { %v545_v53 = vor.u32 1.1754944e-38, %v544_v57  ;;  %vm543_vm14 = vcmp.eq.f32.partialorder %v542_v59, 8.507059e+37  ;;  %v2348_v57 = vld [vmem:[#allocation7 + $0xf0] sm:$0xff]  ;;  %v2357_v59 = vld [vmem:[#allocation7 + $0xc8] sm:$0xff] }
 0x211   :  { %v564_v2 = vor.u32 1.1754944e-38, %v563_v0  ;;  %vm562_vm15 = vcmp.eq.f32.partialorder %v561_v56, 8.507059e+37  ;;  %v2351_v0 = vld [vmem:[#allocation7 + $0xf8] sm:$0xff] }
 0x212   :  { %v1487_v46 = vpop.eup %1486  ;;  %v2363_v56 = vld [vmem:[#allocation7 + $0xd8] sm:$0xff] }
 0x213   :  { %v571_v55 = vadd.f32 1.0, %v1487_v46  ;;  %v2321_v46 = vld [vmem:[#allocation7 + $0x128] sm:$0xff]  ;;  %2781 = vst [vmem:[#allocation28_spill] sm:$0xff] %v2363_v56 }
 0x214   :  { %v1489_v48 = vpop.eup %1488 }
 0x215   :  { %v1491_v54 = vpop.eup %1490  ;;  %v534_v50 = vmul.f32 %v1489_v48, %v532_v36  ;;  %1492 = vrcp.f32 %v571_v55  ;;  %vm539_vm8 = vweird.f32 %v1489_v48  ;;  %v583_v14 = vand.u32 2147483648, %v571_v55  ;;  %v2309_v36 = vld [vmem:[#allocation7 + $0x148] sm:$0xff] }
 0x216   :  { %v553_v42 = vmul.f32 %v1491_v54, %v551_v37  ;;  %1494 = vtanh.f32 %v527_v61  ;;  %vm558_vm9 = vweird.f32 %v1491_v54  ;;  %vm540_vm12 = vmor %vm538_vm10, %vm539_vm8  ;;  %vm577_vm1 = vweird.f32 %v571_v55  ;;  %v2312_v37 = vld [vmem:[#allocation7 + $0x150] sm:$0xff]  ;;  %v2330_v61 = vld [vmem:[#allocation7 + $0x100] sm:$0xff] }
 0x217   :  { %v535_v52 = vsub.f32 1.0, %v534_v50  ;;  %vm559_vm13 = vmor %vm557_vm11, %vm558_vm9  ;;  %v581_v15 = vand.u32 2147483647, %v571_v55  ;;  %v584_v17 = vor.u32 1.1754944e-38, %v583_v14  ;;  %v2336_v50 = vld [vmem:[#allocation7 + $0x110] sm:$0xff]  ;;  %v2414_v14 = vld [vmem:[#allocation7 + $0x20] sm:$0xff] }
 0x218   :  { %v554_v63 = vsub.f32 1.0, %v553_v42  ;;  %v2339_v42 = vld [vmem:[#allocation7 + $0x118] sm:$0xff]  ;;  %2798 = vst [vmem:[#allocation27_spill] sm:$0xff] %v2414_v14 }
 0x219   :  { %v536_v41 = vmul.f32 %v1489_v48, %v535_v52  ;;  %vm582_vm3 = vcmp.eq.f32.partialorder %v581_v15, 8.507059e+37  ;;  %v2342_v52 = vld [vmem:[#allocation7 + $0xe0] sm:$0xff]  ;;  %v2417_v15 = vld [vmem:[#allocation7 + $0x28] sm:$0xff] }
 0x21a   :  { %v555_v51 = vmul.f32 %v1491_v54, %v554_v63  ;;  %v2345_v63 = vld [vmem:[#allocation7 + $0xe8] sm:$0xff]  ;;  %2799 = vst [vmem:[#allocation29_spill] sm:$0xff] %v2417_v15 }
 0x21b   :  { %v1493_v38 = vpop.eup %1492  ;;  %v537_v45 = vadd.f32 %v1489_v48, %v536_v41  ;;  %v2354_v41 = vld [vmem:[#allocation7 + $0xc0] sm:$0xff] }
 0x21c   :  { %v556_v58 = vadd.f32 %v1491_v54, %v555_v51  ;;  %v573_v1 = vmul.f32 %v1493_v38, %v571_v55  ;;  %v1495_v4 = vpop.eup %1494  ;;  %vm578_vm0 = vweird.f32 %v1493_v38  ;;  %v2324_v55 = vld [vmem:[#allocation7 + $0x130] sm:$0xff] }
 0x21d   :  { %v541_v3 = vsel %vm540_vm12, %v1489_v48, %v537_v45  ;;  %vm579_vm2 = vmor %vm577_vm1, %vm578_vm0  ;;  %v2327_v48 = vld [vmem:[#allocation7 + $0x138] sm:$0xff]  ;;  %v2360_v51 = vld [vmem:[#allocation7 + $0xd0] sm:$0xff] }
 0x21e   :  { %v546_v5 = vsel %vm543_vm14, %v545_v53, %v541_v3  ;;  %v560_v6 = vsel %vm559_vm13, %v1491_v54, %v556_v58  ;;  %v574_v7 = vsub.f32 1.0, %v573_v1  ;;  %v2333_v54 = vld [vmem:[#allocation7 + $0x108] sm:$0xff]  ;;  %2780 = vst [vmem:[#allocation14_spill] sm:$0xff] %v2360_v51  ;;  %v2372_v53 = vld [vmem:[#allocation7 + $0xb0] sm:$0xff]  ;;  %v2375_v58 = vld [vmem:[#allocation7 + $0xb8] sm:$0xff] }
 0x21f   :  { %v565_v8 = vsel %vm562_vm15, %v564_v2, %v560_v6  ;;  %v588_v9 = vmul.f32 %v1495_v4, %v546_v5  ;;  %v2369_v45 = vld [vmem:[#allocation7 + $0xa8] sm:$0xff]  ;;  %2784 = vst [vmem:[#allocation17_spill] sm:$0xff] %v2372_v53  ;;  %v2378_v1 = vld [vmem:[#allocation7 + $0x80] sm:$0xff]  ;;  %v2384_v3 = vld [vmem:[#allocation7 + $0x90] sm:$0xff] }
 0x220   :  { %v587_v10 = vmul.f32 %v565_v8, %v2175_v62  ;;  %v575_v11 = vmul.f32 %v1493_v38, %v574_v7  ;;  %v2246_v62 = vld [vmem:[#allocation7 + $0x1e0] sm:$0xff]  ;;  %2783 = vst [vmem:[#allocation16_spill] sm:$0xff] %v2369_v45  ;;  %v2381_v2 = vld [vmem:[#allocation7 + $0x88] sm:$0xff]  ;;  %v2387_v4 = vld [vmem:[#allocation7 + $0x98] sm:$0xff] }
 0x221   :  { %2785 = vst [vmem:[#allocation32_spill] sm:$0xff] %v2375_v58  ;;  %v2390_v5 = vld [vmem:[#allocation7 + $0x60] sm:$0xff]  ;;  %v2393_v6 = vld [vmem:[#allocation7 + $0x68] sm:$0xff]  ;;  %v2396_v7 = vld [vmem:[#allocation7 + $0x70] sm:$0xff] }
 0x222   :  { %v2243_v12 = vadd.f32 %v588_v9, %v587_v10  ;;  %v576_v13 = vadd.f32 %v1493_v38, %v575_v11  ;;  %2786 = vst [vmem:[#allocation18_spill] sm:$0xff] %v2378_v1  ;;  %v2399_v8 = vld [vmem:[#allocation7 + $0x78] sm:$0xff]  ;;  %v2402_v9 = vld [vmem:[#allocation7 + $0x40] sm:$0xff]  ;;  %v2405_v10 = vld [vmem:[#allocation7 + $0x48] sm:$0xff] }
 0x223   :  { %2787 = vst [vmem:[#allocation19_spill] sm:$0xff] %v2381_v2  ;;  %v2408_v11 = vld [vmem:[#allocation7 + $0x50] sm:$0xff] }
 0x224   :  { %1496 = vtanh.f32 %v2243_v12  ;;  %v580_v16 = vsel %vm579_vm2, %v1493_v38, %v576_v13  ;;  %v2366_v38 = vld [vmem:[#allocation7 + $0xa0] sm:$0xff]  ;;  %2788 = vst [vmem:[#allocation20_spill] sm:$0xff] %v2384_v3  ;;  %v2411_v13 = vld [vmem:[#allocation7 + $0x58] sm:$0xff] }
 0x225   :  { %v585_v19 = vsel %vm582_vm3, %v584_v17, %v580_v16  ;;  %2782 = vst [vmem:[#allocation15_spill] sm:$0xff] %v2366_v38  ;;  %v2420_v16 = vld [vmem:[#allocation7 + $0x30] sm:$0xff]  ;;  %v2423_v17 = vld [vmem:[#allocation7 + $0x38] sm:$0xff] }
 0x226   :  { %2789 = vst [vmem:[#allocation36_spill] sm:$0xff] %v2387_v4 }
 0x227   :  { %2790 = vst [vmem:[#allocation21_spill] sm:$0xff] %v2390_v5 }
 0x228   :  { %2791 = vst [vmem:[#allocation22_spill] sm:$0xff] %v2393_v6 }
 0x229   :  { %2792 = vst [vmem:[#allocation23_spill] sm:$0xff] %v2396_v7 }
 0x22a   :  { %v1497_v18 = vpop.eup %1496  ;;  %2793 = vst [vmem:[#allocation37_spill] sm:$0xff] %v2399_v8 }
 0x22b   :  { %v591_v20 = vmul.f32 %v1497_v18, %v585_v19  ;;  %2794 = vst [vmem:[#allocation24_spill] sm:$0xff] %v2402_v9  ;;  %v2426_v18 = vld [vmem:[#allocation7] sm:$0xff]  ;;  %v2429_v19 = vld [vmem:[#allocation7 + $0x8] sm:$0xff] }
 0x22c   :  { %2795 = vst [vmem:[#allocation25_spill] sm:$0xff] %v2405_v10 }
 0x22d   :  { %613 = vmatmul.f32.vlgmr.msrb.gmra.mxu0 %v591_v20  ;;  %633 = vmatmul.f32.vlgmr.msrb.gmra.mxu1 %v591_v20  ;;  %2796 = vst [vmem:[#allocation26_spill] sm:$0xff] %v2408_v11 }
 0x22e   :  { %653 = vmatmul.f32.vlgmr.msrb.gmra.mxu2 %v591_v20  ;;  %673 = vmatmul.f32.vlgmr.msrb.gmra.mxu3 %v591_v20  ;;  %2797 = vst [vmem:[#allocation38_spill] sm:$0xff] %v2411_v13  ;;  %v2432_v20 = vld [vmem:[#allocation7 + $0x10] sm:$0xff] }
 0x22f   :  { %901 = vmatpush.msrb.mxu0 %v2246_v62  ;;  %921 = vmatpush.msrb.mxu1 %v2249_v21  ;;  %2800 = vst [vmem:[#allocation30_spill] sm:$0xff] %v2420_v16 }
 0x230   :  { %941 = vmatpush.msrb.mxu2 %v2252_v22  ;;  %961 = vmatpush.msrb.mxu3 %v2255_v23  ;;  %2801 = vst [vmem:[#allocation39_spill] sm:$0xff] %v2423_v17 }
 0x231   :  { %902 = vmatpush.msrb.mxu0 %v2258_v24  ;;  %922 = vmatpush.msrb.mxu1 %v2261_v25  ;;  %2802 = vst [vmem:[#allocation31_spill] sm:$0xff] %v2426_v18 }
 0x232   :  { %942 = vmatpush.msrb.mxu2 %v2264_v26  ;;  %962 = vmatpush.msrb.mxu3 %v2267_v27  ;;  %2803 = vst [vmem:[#allocation33_spill] sm:$0xff] %v2429_v19 }
 0x233   :  { %903 = vmatpush.msrb.mxu0 %v2270_v28  ;;  %923 = vmatpush.msrb.mxu1 %v2273_v29  ;;  %2804 = vst [vmem:[#allocation34_spill] sm:$0xff] %v2432_v20 }
 0x234   :  { %943 = vmatpush.msrb.mxu2 %v2276_v30  ;;  %963 = vmatpush.msrb.mxu3 %v2279_v31 }
 0x235   :  { %904 = vmatpush.msrb.mxu0 %v2282_v32  ;;  %924 = vmatpush.msrb.mxu1 %v2285_v33 }
 0x236   :  { %944 = vmatpush.msrb.mxu2 %v2288_v35  ;;  %964 = vmatpush.msrb.mxu3 %v2291_v39 }
 0x237   :  { %905 = vmatpush.msrb.mxu0 %v2294_v43  ;;  %925 = vmatpush.msrb.mxu1 %v2297_v47 }
 0x238   :  { %945 = vmatpush.msrb.mxu2 %v2300_v60  ;;  %965 = vmatpush.msrb.mxu3 %v2303_v44 }
 0x239   :  { %906 = vmatpush.msrb.mxu0 %v2306_v34  ;;  %926 = vmatpush.msrb.mxu1 %v2309_v36 }
 0x23a   :  { %946 = vmatpush.msrb.mxu2 %v2312_v37  ;;  %966 = vmatpush.msrb.mxu3 %v2315_v40 }
 0x23b   :  { %907 = vmatpush.msrb.mxu0 %v2318_v49  ;;  %927 = vmatpush.msrb.mxu1 %v2321_v46 }
 0x23c   :  { %947 = vmatpush.msrb.mxu2 %v2324_v55  ;;  %967 = vmatpush.msrb.mxu3 %v2327_v48 }
 0x23d   :  { %908 = vmatpush.msrb.mxu0 %v2330_v61  ;;  %928 = vmatpush.msrb.mxu1 %v2333_v54 }
 0x23e   :  { %948 = vmatpush.msrb.mxu2 %v2336_v50  ;;  %968 = vmatpush.msrb.mxu3 %v2339_v42 }
 0x23f   :  { %909 = vmatpush.msrb.mxu0 %v2342_v52  ;;  %929 = vmatpush.msrb.mxu1 %v2345_v63 }
 0x240   :  { %949 = vmatpush.msrb.mxu2 %v2348_v57  ;;  %969 = vmatpush.msrb.mxu3 %v2351_v0 }
 0x241   :  { %910 = vmatpush.msrb.mxu0 %v2354_v41  ;;  %930 = vmatpush.msrb.mxu1 %v2357_v59 }
 0x242   :  { %950 = vmatpush.msrb.mxu2 %v2360_v51  ;;  %970 = vmatpush.msrb.mxu3 %v2363_v56 }
 0x243   :  { %911 = vmatpush.msrb.mxu0 %v2366_v38  ;;  %931 = vmatpush.msrb.mxu1 %v2369_v45 }
 0x244   :  { %951 = vmatpush.msrb.mxu2 %v2372_v53  ;;  %971 = vmatpush.msrb.mxu3 %v2375_v58 }
 0x245   :  { %912 = vmatpush.msrb.mxu0 %v2378_v1  ;;  %932 = vmatpush.msrb.mxu1 %v2381_v2 }
 0x246   :  { %952 = vmatpush.msrb.mxu2 %v2384_v3  ;;  %972 = vmatpush.msrb.mxu3 %v2387_v4 }
 0x247   :  { %913 = vmatpush.msrb.mxu0 %v2390_v5  ;;  %933 = vmatpush.msrb.mxu1 %v2393_v6 }
 0x248   :  { %953 = vmatpush.msrb.mxu2 %v2396_v7  ;;  %973 = vmatpush.msrb.mxu3 %v2399_v8  ;;  %v596_v8 = vld [vmem:[#allocation4 + $0x78] sm:$0xff] }
 0x249   :  { %914 = vmatpush.msrb.mxu0 %v2402_v9  ;;  %934 = vmatpush.msrb.mxu1 %v2405_v10 }
 0x24a   :  { %954 = vmatpush.msrb.mxu2 %v2408_v11  ;;  %974 = vmatpush.msrb.mxu3 %v2411_v13 }
 0x24b   :  { %915 = vmatpush.msrb.mxu0 %v2414_v14  ;;  %935 = vmatpush.msrb.mxu1 %v2417_v15  ;;  %v2435_v15 = vld [vmem:[#allocation7 + $0x18] sm:$0xff]  ;;  %v594_v14 = vld [vmem:[#allocation4 + $0x68] sm:$0xff] }
 0x24c   :  { %955 = vmatpush.msrb.mxu2 %v2420_v16  ;;  %975 = vmatpush.msrb.mxu3 %v2423_v17  ;;  %2805 = vst [vmem:[#allocation40_spill] sm:$0xff] %v2435_v15  ;;  %v593_v16 = vld [vmem:[#allocation4 + $0x60] sm:$0xff] }
 0x24d   :  { %916 = vmatpush.msrb.mxu0 %v2426_v18  ;;  %936 = vmatpush.msrb.mxu1 %v2429_v19 }
 0x24e   :  { %956 = vmatpush.msrb.mxu2 %v2432_v20  ;;  %976 = vmatpush.msrb.mxu3 %v2435_v15  ;;  %v595_v15 = vld [vmem:[#allocation4 + $0x70] sm:$0xff] }
 0x2aa   :  { %v614_v13 = vpop.f32.mrf.mxu0  ;;  %v634_v17 = vpop.f32.mrf.mxu1 }
 0x2ab   :  { %v677_v11 = vadd.f32 %v614_v13, %v593_v16  ;;  %v678_v10 = vadd.f32 %v634_v17, %v594_v14 }
 0x2ad   :  { %v1425_v9 = vmul.f32 -1.442695, %v677_v11  ;;  %v1426_v18 = vmul.f32 -1.442695, %v678_v10 }
 0x2af   :  { %1498 = vpow2.f32 %v1425_v9 }
 0x2b0   :  { %1500 = vpow2.f32 %v1426_v18 }
 0x2b1   :  { %v674_v19 = vpop.f32.mrf.mxu3  ;;  %v654_v2 = vpop.f32.mrf.mxu2 }
 0x2b2   :  { %v680_v7 = vadd.f32 %v674_v19, %v596_v8  ;;  %v679_v11 = vadd.f32 %v654_v2, %v595_v15 }
 0x2b4   :  { %v1427_v6 = vmul.f32 -1.442695, %v680_v7 }
 0x2b5   :  { %v1499_v5 = vpop.eup %1498 }
 0x2b6   :  { %v1501_v20 = vpop.eup %1500  ;;  %v684_v4 = vadd.f32 1.0, %v1499_v5  ;;  %1502 = vpow2.f32 %v1427_v6 }
 0x2b7   :  { %v703_v3 = vadd.f32 1.0, %v1501_v20 }
 0x2b8   :  { %1504 = vrcp.f32 %v684_v4  ;;  %v696_v7 = vand.u32 2147483648, %v684_v4  ;;  %v694_v6 = vand.u32 2147483647, %v684_v4  ;;  %vm690_vm6 = vweird.f32 %v684_v4 }
 0x2b9   :  { %1506 = vrcp.f32 %v703_v3  ;;  %v715_v18 = vand.u32 2147483648, %v703_v3  ;;  %v713_v20 = vand.u32 2147483647, %v703_v3  ;;  %vm709_vm7 = vweird.f32 %v703_v3 }
 0x2ba   :  { %vm695_vm10 = vcmp.eq.f32.partialorder %v694_v6, 8.507059e+37 }
 0x2bb   :  { %vm714_vm11 = vcmp.eq.f32.partialorder %v713_v20, 8.507059e+37  ;;  %v2813_v20 = vld [vmem:[#allocation19_spill] sm:$0xff] }
 0x2bc   :  { %v1503_v1 = vpop.eup %1502 }
 0x2bd   :  { %v723_v13 = vadd.f32 1.0, %v1503_v1  ;;  %v697_v1 = vor.u32 1.1754944e-38, %v696_v7 }
 0x2be   :  { %v1505_v14 = vpop.eup %1504 }
 0x2bf   :  { %v1507_v10 = vpop.eup %1506  ;;  %v686_v9 = vmul.f32 %v1505_v14, %v684_v4  ;;  %1508 = vrcp.f32 %v723_v13  ;;  %vm691_vm4 = vweird.f32 %v1505_v14  ;;  %v735_v7 = vand.u32 2147483648, %v723_v13 }
 0x2c0   :  { %v705_v16 = vmul.f32 %v1507_v10, %v703_v3  ;;  %1510 = vtanh.f32 %v679_v11  ;;  %vm710_vm5 = vweird.f32 %v1507_v10  ;;  %vm692_vm8 = vmor %vm690_vm6, %vm691_vm4  ;;  %vm729_vm13 = vweird.f32 %v723_v13 }
 0x2c1   :  { %v687_v17 = vsub.f32 1.0, %v686_v9  ;;  %vm711_vm9 = vmor %vm709_vm7, %vm710_vm5  ;;  %v716_v9 = vor.u32 1.1754944e-38, %v715_v18  ;;  %v736_v18 = vor.u32 1.1754944e-38, %v735_v7  ;;  %v2824_v7 = vld [vmem:[#allocation27_spill] sm:$0xff] }
 0x2c2   :  { %v706_v8 = vsub.f32 1.0, %v705_v16 }
 0x2c3   :  { %v688_v5 = vmul.f32 %v1505_v14, %v687_v17 }
 0x2c4   :  { %v707_v19 = vmul.f32 %v1507_v10, %v706_v8 }
 0x2c5   :  { %v1509_v58 = vpop.eup %1508  ;;  %v689_v53 = vadd.f32 %v1505_v14, %v688_v5 }
 0x2c6   :  { %v708_v2 = vadd.f32 %v1507_v10, %v707_v19  ;;  %v725_v15 = vmul.f32 %v1509_v58, %v723_v13  ;;  %v1511_v11 = vpop.eup %1510  ;;  %vm730_vm12 = vweird.f32 %v1509_v58 }
 0x2c7   :  { %v693_v16 = vsel %vm692_vm8, %v1505_v14, %v689_v53  ;;  %v733_v53 = vand.u32 2147483647, %v723_v13  ;;  %vm731_vm14 = vmor %vm729_vm13, %vm730_vm12  ;;  %v2812_v13 = vld [vmem:[#allocation18_spill] sm:$0xff] }
 0x2c8   :  { %v698_v45 = vsel %vm695_vm10, %v697_v1, %v693_v16  ;;  %v712_v17 = vsel %vm711_vm9, %v1507_v10, %v708_v2  ;;  %v726_v38 = vsub.f32 1.0, %v725_v15  ;;  %v2814_v1 = vld [vmem:[#allocation20_spill] sm:$0xff]  ;;  %v2816_v15 = vld [vmem:[#allocation21_spill] sm:$0xff]  ;;  %v2818_v16 = vld [vmem:[#allocation23_spill] sm:$0xff] }
 0x2c9   :  { %v717_v8 = vsel %vm714_vm11, %v716_v9, %v712_v17  ;;  %v740_v56 = vmul.f32 %v1511_v11, %v698_v45  ;;  %vm734_vm15 = vcmp.eq.f32.partialorder %v733_v53, 8.507059e+37  ;;  %v2810_v45 = vld [vmem:[#allocation17_spill] sm:$0xff]  ;;  %v2815_v2 = vld [vmem:[#allocation36_spill] sm:$0xff]  ;;  %v2817_v9 = vld [vmem:[#allocation22_spill] sm:$0xff] }
 0x2ca   :  { %v739_v51 = vmul.f32 %v717_v8, %v2243_v12  ;;  %v727_v5 = vmul.f32 %v1509_v58, %v726_v38  ;;  %v2806_v12 = vld [vmem:[#allocation14_spill] sm:$0xff]  ;;  %v2809_v38 = vld [vmem:[#allocation16_spill] sm:$0xff]  ;;  %v2819_v11 = vld [vmem:[#allocation37_spill] sm:$0xff] }
 0x2cb   :  { %v2820_v17 = vld [vmem:[#allocation24_spill] sm:$0xff]  ;;  %v2821_v8 = vld [vmem:[#allocation25_spill] sm:$0xff] }
 0x2cc   :  { %v2439_v4 = vadd.f32 %v740_v56, %v739_v51  ;;  %v728_v3 = vadd.f32 %v1509_v58, %v727_v5  ;;  %v2807_v51 = vld [vmem:[#allocation28_spill] sm:$0xff]  ;;  %v2808_v56 = vld [vmem:[#allocation15_spill] sm:$0xff]  ;;  %v2822_v5 = vld [vmem:[#allocation26_spill] sm:$0xff] }
 0x2cd   :  { %v2825_v53 = vld [vmem:[#allocation29_spill] sm:$0xff] }
 0x2ce   :  { %1512 = vtanh.f32 %v2439_v4  ;;  %v732_v14 = vsel %vm731_vm14, %v1509_v58, %v728_v3  ;;  %v2811_v58 = vld [vmem:[#allocation32_spill] sm:$0xff]  ;;  %v2823_v3 = vld [vmem:[#allocation38_spill] sm:$0xff] }
 0x2cf   :  { %v737_v6 = vsel %vm734_vm15, %v736_v18, %v732_v14  ;;  %v2826_v14 = vld [vmem:[#allocation30_spill] sm:$0xff]  ;;  %v2827_v18 = vld [vmem:[#allocation39_spill] sm:$0xff] }
 0x2d4   :  { %v1513_v10 = vpop.eup %1512 }
 0x2d5   :  { %v743_v19 = vmul.f32 %v1513_v10, %v737_v6  ;;  %v2828_v10 = vld [vmem:[#allocation31_spill] sm:$0xff]  ;;  %v2829_v6 = vld [vmem:[#allocation33_spill] sm:$0xff] }
 0x2d7   :  { %765 = vmatmul.f32.vlgmr.msra.gmra.mxu0 %v743_v19  ;;  %785 = vmatmul.f32.vlgmr.msra.gmra.mxu1 %v743_v19 }
 0x2d8   :  { %805 = vmatmul.f32.vlgmr.msra.gmra.mxu2 %v743_v19  ;;  %825 = vmatmul.f32.vlgmr.msra.gmra.mxu3 %v743_v19  ;;  %v2830_v19 = vld [vmem:[#allocation34_spill] sm:$0xff] }
 0x2d9   :  { %1053 = vmatpush.msra.mxu0 %v2246_v62  ;;  %1073 = vmatpush.msra.mxu1 %v2249_v21 }
 0x2da   :  { %1093 = vmatpush.msra.mxu2 %v2252_v22  ;;  %1113 = vmatpush.msra.mxu3 %v2255_v23 }
 0x2db   :  { %1054 = vmatpush.msra.mxu0 %v2258_v24  ;;  %1074 = vmatpush.msra.mxu1 %v2261_v25 }
 0x2dc   :  { %1094 = vmatpush.msra.mxu2 %v2264_v26  ;;  %1114 = vmatpush.msra.mxu3 %v2267_v27 }
 0x2dd   :  { %1055 = vmatpush.msra.mxu0 %v2270_v28  ;;  %1075 = vmatpush.msra.mxu1 %v2273_v29 }
 0x2de   :  { %1095 = vmatpush.msra.mxu2 %v2276_v30  ;;  %1115 = vmatpush.msra.mxu3 %v2279_v31 }
 0x2df   :  { %1056 = vmatpush.msra.mxu0 %v2282_v32  ;;  %1076 = vmatpush.msra.mxu1 %v2285_v33 }
 0x2e0   :  { %1096 = vmatpush.msra.mxu2 %v2288_v35  ;;  %1116 = vmatpush.msra.mxu3 %v2291_v39 }
 0x2e1   :  { %1057 = vmatpush.msra.mxu0 %v2294_v43  ;;  %1077 = vmatpush.msra.mxu1 %v2297_v47 }
 0x2e2   :  { %1097 = vmatpush.msra.mxu2 %v2300_v60  ;;  %1117 = vmatpush.msra.mxu3 %v2303_v44 }
 0x2e3   :  { %1058 = vmatpush.msra.mxu0 %v2306_v34  ;;  %1078 = vmatpush.msra.mxu1 %v2309_v36 }
 0x2e4   :  { %1098 = vmatpush.msra.mxu2 %v2312_v37  ;;  %1118 = vmatpush.msra.mxu3 %v2315_v40 }
 0x2e5   :  { %1059 = vmatpush.msra.mxu0 %v2318_v49  ;;  %1079 = vmatpush.msra.mxu1 %v2321_v46 }
 0x2e6   :  { %1099 = vmatpush.msra.mxu2 %v2324_v55  ;;  %1119 = vmatpush.msra.mxu3 %v2327_v48 }
 0x2e7   :  { %1060 = vmatpush.msra.mxu0 %v2330_v61  ;;  %1080 = vmatpush.msra.mxu1 %v2333_v54 }
 0x2e8   :  { %1100 = vmatpush.msra.mxu2 %v2336_v50  ;;  %1120 = vmatpush.msra.mxu3 %v2339_v42 }
 0x2e9   :  { %1061 = vmatpush.msra.mxu0 %v2342_v52  ;;  %1081 = vmatpush.msra.mxu1 %v2345_v63 }
 0x2ea   :  { %1101 = vmatpush.msra.mxu2 %v2348_v57  ;;  %1121 = vmatpush.msra.mxu3 %v2351_v0 }
 0x2eb   :  { %1062 = vmatpush.msra.mxu0 %v2354_v41  ;;  %1082 = vmatpush.msra.mxu1 %v2357_v59 }
 0x2ec   :  { %1102 = vmatpush.msra.mxu2 %v2806_v12  ;;  %1122 = vmatpush.msra.mxu3 %v2807_v51 }
 0x2ed   :  { %1063 = vmatpush.msra.mxu0 %v2808_v56  ;;  %1083 = vmatpush.msra.mxu1 %v2809_v38 }
 0x2ee   :  { %1103 = vmatpush.msra.mxu2 %v2810_v45  ;;  %1123 = vmatpush.msra.mxu3 %v2811_v58 }
 0x2ef   :  { %1064 = vmatpush.msra.mxu0 %v2812_v13  ;;  %1084 = vmatpush.msra.mxu1 %v2813_v20 }
 0x2f0   :  { %1104 = vmatpush.msra.mxu2 %v2814_v1  ;;  %1124 = vmatpush.msra.mxu3 %v2815_v2 }
 0x2f1   :  { %1065 = vmatpush.msra.mxu0 %v2816_v15  ;;  %1085 = vmatpush.msra.mxu1 %v2817_v9 }
 0x2f2   :  { %1105 = vmatpush.msra.mxu2 %v2818_v16  ;;  %1125 = vmatpush.msra.mxu3 %v2819_v11 }
 0x2f3   :  { %1066 = vmatpush.msra.mxu0 %v2820_v17  ;;  %1086 = vmatpush.msra.mxu1 %v2821_v8  ;;  %v2831_v17 = vld [vmem:[#allocation40_spill] sm:$0xff]  ;;  %v745_v8 = vld [vmem:[#allocation4 + $0x80] sm:$0xff] }
 0x2f4   :  { %1106 = vmatpush.msra.mxu2 %v2822_v5  ;;  %1126 = vmatpush.msra.mxu3 %v2823_v3  ;;  %v746_v5 = vld [vmem:[#allocation4 + $0x88] sm:$0xff] }
 0x2f5   :  { %1067 = vmatpush.msra.mxu0 %v2824_v7  ;;  %1087 = vmatpush.msra.mxu1 %v2825_v53 }
 0x2f6   :  { %1107 = vmatpush.msra.mxu2 %v2826_v14  ;;  %1127 = vmatpush.msra.mxu3 %v2827_v18  ;;  %v748_v14 = vld [vmem:[#allocation4 + $0x98] sm:$0xff] }
 0x2f7   :  { %1068 = vmatpush.msra.mxu0 %v2828_v10  ;;  %1088 = vmatpush.msra.mxu1 %v2829_v6 }
 0x2f8   :  { %1108 = vmatpush.msra.mxu2 %v2830_v19  ;;  %1128 = vmatpush.msra.mxu3 %v2831_v17  ;;  %v747_v17 = vld [vmem:[#allocation4 + $0x90] sm:$0xff] }
 0x354   :  { %v766_v11 = vpop.f32.mrf.mxu0  ;;  %v786_v3 = vpop.f32.mrf.mxu1 }
 0x355   :  { %v829_v16 = vadd.f32 %v766_v11, %v745_v8  ;;  %v830_v7 = vadd.f32 %v786_v3, %v746_v5 }
 0x357   :  { %v1428_v9 = vmul.f32 -1.442695, %v829_v16  ;;  %v1429_v53 = vmul.f32 -1.442695, %v830_v7 }
 0x359   :  { %1514 = vpow2.f32 %v1428_v9 }
 0x35a   :  { %1516 = vpow2.f32 %v1429_v53 }
 0x35b   :  { %v826_v18 = vpop.f32.mrf.mxu3  ;;  %v806_v20 = vpop.f32.mrf.mxu2 }
 0x35c   :  { %v832_v15 = vadd.f32 %v826_v18, %v748_v14  ;;  %v831_v16 = vadd.f32 %v806_v20, %v747_v17 }
 0x35e   :  { %v1430_v10 = vmul.f32 -1.442695, %v832_v15 }
 0x35f   :  { %v1515_v2 = vpop.eup %1514 }
 0x360   :  { %v1517_v6 = vpop.eup %1516  ;;  %v836_v1 = vadd.f32 1.0, %v1515_v2  ;;  %1518 = vpow2.f32 %v1430_v10 }
 0x361   :  { %v855_v19 = vadd.f32 1.0, %v1517_v6 }
 0x362   :  { %1520 = vrcp.f32 %v836_v1  ;;  %v848_v15 = vand.u32 2147483648, %v836_v1  ;;  %v846_v18 = vand.u32 2147483647, %v836_v1  ;;  %vm842_vm2 = vweird.f32 %v836_v1 }
 0x363   :  { %1522 = vrcp.f32 %v855_v19  ;;  %v867_v14 = vand.u32 2147483648, %v855_v19  ;;  %v865_v6 = vand.u32 2147483647, %v855_v19  ;;  %vm861_vm3 = vweird.f32 %v855_v19 }
 0x364   :  { %vm847_vm6 = vcmp.eq.f32.partialorder %v846_v18, 8.507059e+37 }
 0x365   :  { %vm866_vm7 = vcmp.eq.f32.partialorder %v865_v6, 8.507059e+37 }
 0x366   :  { %v1519_v13 = vpop.eup %1518 }
 0x367   :  { %v875_v11 = vadd.f32 1.0, %v1519_v13  ;;  %v849_v13 = vor.u32 1.1754944e-38, %v848_v15 }
 0x368   :  { %v1521_v8 = vpop.eup %1520 }
 0x369   :  { %v1523_v5 = vpop.eup %1522  ;;  %v838_v9 = vmul.f32 %v1521_v8, %v836_v1  ;;  %1524 = vrcp.f32 %v875_v11  ;;  %vm843_vm0 = vweird.f32 %v1521_v8  ;;  %v887_v15 = vand.u32 2147483648, %v875_v11 }
 0x36a   :  { %v857_v3 = vmul.f32 %v1523_v5, %v855_v19  ;;  %1526 = vtanh.f32 %v831_v16  ;;  %vm862_vm1 = vweird.f32 %v1523_v5  ;;  %vm844_vm4 = vmor %vm842_vm2, %vm843_vm0  ;;  %vm881_vm9 = vweird.f32 %v875_v11 }
 0x36b   :  { %v839_v7 = vsub.f32 1.0, %v838_v9  ;;  %vm863_vm5 = vmor %vm861_vm3, %vm862_vm1  ;;  %v868_v9 = vor.u32 1.1754944e-38, %v867_v14  ;;  %v888_v14 = vor.u32 1.1754944e-38, %v887_v15 }
 0x36c   :  { %v858_v53 = vsub.f32 1.0, %v857_v3 }
 0x36d   :  { %v840_v2 = vmul.f32 %v1521_v8, %v839_v7 }
 0x36e   :  { %v859_v10 = vmul.f32 %v1523_v5, %v858_v53 }
 0x36f   :  { %v1525_v58 = vpop.eup %1524  ;;  %v841_v45 = vadd.f32 %v1521_v8, %v840_v2 }
 0x370   :  { %v860_v20 = vadd.f32 %v1523_v5, %v859_v10  ;;  %v877_v17 = vmul.f32 %v1525_v58, %v875_v11  ;;  %v1527_v16 = vpop.eup %1526  ;;  %vm882_vm8 = vweird.f32 %v1525_v58 }
 0x371   :  { %v845_v3 = vsel %vm844_vm4, %v1521_v8, %v841_v45  ;;  %v885_v45 = vand.u32 2147483647, %v875_v11  ;;  %vm883_vm10 = vmor %vm881_vm9, %vm882_vm8 }
 0x372   :  { %v850_v38 = vsel %vm847_vm6, %v849_v13, %v845_v3  ;;  %v864_v7 = vsel %vm863_vm5, %v1523_v5, %v860_v20  ;;  %v878_v56 = vsub.f32 1.0, %v877_v17 }
 0x373   :  { %v869_v53 = vsel %vm866_vm7, %v868_v9, %v864_v7  ;;  %v892_v51 = vmul.f32 %v1527_v16, %v850_v38  ;;  %vm886_vm11 = vcmp.eq.f32.partialorder %v885_v45, 8.507059e+37  ;;  %v899_v38 = vld [vmem:[#allocation4 + $0xb0] sm:$0xff] }
 0x374   :  { %v891_v12 = vmul.f32 %v869_v53, %v2439_v4  ;;  %v879_v2 = vmul.f32 %v1525_v58, %v878_v56 }
 0x376   :  { %v2507_v1 = vadd.f32 %v892_v51, %v891_v12  ;;  %v880_v19 = vadd.f32 %v1525_v58, %v879_v2 }
 0x378   :  { %1528 = vtanh.f32 %v2507_v1  ;;  %v884_v8 = vsel %vm883_vm10, %v1525_v58, %v880_v19 }
 0x379   :  { %v889_v18 = vsel %vm886_vm11, %v888_v14, %v884_v8 }
 0x37e   :  { %v1529_v5 = vpop.eup %1528 }
 0x37f   :  { %v895_v10 = vmul.f32 %v1529_v5, %v889_v18 }
 0x381   :  { %917 = vmatmul.f32.vlgmr.msrb.gmra.mxu0 %v895_v10  ;;  %937 = vmatmul.f32.vlgmr.msrb.gmra.mxu1 %v895_v10 }
 0x382   :  { %957 = vmatmul.f32.vlgmr.msrb.gmra.mxu2 %v895_v10  ;;  %977 = vmatmul.f32.vlgmr.msrb.gmra.mxu3 %v895_v10 }
 0x383   :  { %1205 = vmatpush.msrb.mxu0 %v2246_v62  ;;  %1225 = vmatpush.msrb.mxu1 %v2249_v21  ;;  %v2832_v62 = vld [vmem:[#allocation14_spill] sm:$0xff]  ;;  %v2833_v21 = vld [vmem:[#allocation28_spill] sm:$0xff] }
 0x384   :  { %1245 = vmatpush.msrb.mxu2 %v2252_v22  ;;  %1265 = vmatpush.msrb.mxu3 %v2255_v23  ;;  %v2834_v22 = vld [vmem:[#allocation15_spill] sm:$0xff]  ;;  %v2835_v23 = vld [vmem:[#allocation16_spill] sm:$0xff] }
 0x385   :  { %1206 = vmatpush.msrb.mxu0 %v2258_v24  ;;  %1226 = vmatpush.msrb.mxu1 %v2261_v25  ;;  %v2836_v24 = vld [vmem:[#allocation17_spill] sm:$0xff]  ;;  %v2837_v25 = vld [vmem:[#allocation32_spill] sm:$0xff] }
 0x386   :  { %1246 = vmatpush.msrb.mxu2 %v2264_v26  ;;  %1266 = vmatpush.msrb.mxu3 %v2267_v27  ;;  %v2838_v26 = vld [vmem:[#allocation18_spill] sm:$0xff]  ;;  %v2839_v27 = vld [vmem:[#allocation19_spill] sm:$0xff] }
 0x387   :  { %1207 = vmatpush.msrb.mxu0 %v2270_v28  ;;  %1227 = vmatpush.msrb.mxu1 %v2273_v29  ;;  %v2840_v28 = vld [vmem:[#allocation20_spill] sm:$0xff] }
 0x388   :  { %1247 = vmatpush.msrb.mxu2 %v2276_v30  ;;  %1267 = vmatpush.msrb.mxu3 %v2279_v31  ;;  %v2841_v29 = vld [vmem:[#allocation36_spill] sm:$0xff]  ;;  %v2842_v30 = vld [vmem:[#allocation21_spill] sm:$0xff]  ;;  %v2843_v31 = vld [vmem:[#allocation22_spill] sm:$0xff] }
 0x389   :  { %1208 = vmatpush.msrb.mxu0 %v2282_v32  ;;  %1228 = vmatpush.msrb.mxu1 %v2285_v33  ;;  %v2844_v32 = vld [vmem:[#allocation23_spill] sm:$0xff]  ;;  %v2845_v33 = vld [vmem:[#allocation37_spill] sm:$0xff] }
 0x38a   :  { %1248 = vmatpush.msrb.mxu2 %v2288_v35  ;;  %1268 = vmatpush.msrb.mxu3 %v2291_v39  ;;  %v2846_v35 = vld [vmem:[#allocation24_spill] sm:$0xff]  ;;  %v2847_v39 = vld [vmem:[#allocation25_spill] sm:$0xff] }
 0x38b   :  { %1209 = vmatpush.msrb.mxu0 %v2294_v43  ;;  %1229 = vmatpush.msrb.mxu1 %v2297_v47  ;;  %v2848_v43 = vld [vmem:[#allocation26_spill] sm:$0xff] }
 0x38c   :  { %1249 = vmatpush.msrb.mxu2 %v2300_v60  ;;  %1269 = vmatpush.msrb.mxu3 %v2303_v44  ;;  %v2849_v47 = vld [vmem:[#allocation38_spill] sm:$0xff]  ;;  %v2850_v60 = vld [vmem:[#allocation27_spill] sm:$0xff]  ;;  %v2851_v44 = vld [vmem:[#allocation29_spill] sm:$0xff] }
 0x38d   :  { %1210 = vmatpush.msrb.mxu0 %v2306_v34  ;;  %1230 = vmatpush.msrb.mxu1 %v2309_v36  ;;  %v2852_v34 = vld [vmem:[#allocation30_spill] sm:$0xff]  ;;  %v2853_v36 = vld [vmem:[#allocation39_spill] sm:$0xff] }
 0x38e   :  { %1250 = vmatpush.msrb.mxu2 %v2312_v37  ;;  %1270 = vmatpush.msrb.mxu3 %v2315_v40  ;;  %v2854_v37 = vld [vmem:[#allocation31_spill] sm:$0xff]  ;;  %v2855_v40 = vld [vmem:[#allocation33_spill] sm:$0xff] }
 0x38f   :  { %1211 = vmatpush.msrb.mxu0 %v2318_v49  ;;  %1231 = vmatpush.msrb.mxu1 %v2321_v46  ;;  %v2856_v49 = vld [vmem:[#allocation34_spill] sm:$0xff]  ;;  %v2857_v46 = vld [vmem:[#allocation40_spill] sm:$0xff] }
 0x390   :  { %1251 = vmatpush.msrb.mxu2 %v2324_v55  ;;  %1271 = vmatpush.msrb.mxu3 %v2327_v48  ;;  %v897_v55 = vld [vmem:[#allocation4 + $0xa0] sm:$0xff]  ;;  %v898_v48 = vld [vmem:[#allocation4 + $0xa8] sm:$0xff] }
 0x391   :  { %1212 = vmatpush.msrb.mxu0 %v2330_v61  ;;  %1232 = vmatpush.msrb.mxu1 %v2333_v54 }
 0x392   :  { %1252 = vmatpush.msrb.mxu2 %v2336_v50  ;;  %1272 = vmatpush.msrb.mxu3 %v2339_v42 }
 0x393   :  { %1213 = vmatpush.msrb.mxu0 %v2342_v52  ;;  %1233 = vmatpush.msrb.mxu1 %v2345_v63 }
 0x394   :  { %1253 = vmatpush.msrb.mxu2 %v2348_v57  ;;  %1273 = vmatpush.msrb.mxu3 %v2351_v0  ;;  %v900_v57 = vld [vmem:[#allocation4 + $0xb8] sm:$0xff] }
 0x395   :  { %1214 = vmatpush.msrb.mxu0 %v2354_v41  ;;  %1234 = vmatpush.msrb.mxu1 %v2357_v59 }
 0x396   :  { %1254 = vmatpush.msrb.mxu2 %v2832_v62  ;;  %1274 = vmatpush.msrb.mxu3 %v2833_v21 }
 0x397   :  { %1215 = vmatpush.msrb.mxu0 %v2834_v22  ;;  %1235 = vmatpush.msrb.mxu1 %v2835_v23 }
 0x398   :  { %1255 = vmatpush.msrb.mxu2 %v2836_v24  ;;  %1275 = vmatpush.msrb.mxu3 %v2837_v25 }
 0x399   :  { %1216 = vmatpush.msrb.mxu0 %v2838_v26  ;;  %1236 = vmatpush.msrb.mxu1 %v2839_v27 }
 0x39a   :  { %1256 = vmatpush.msrb.mxu2 %v2840_v28  ;;  %1276 = vmatpush.msrb.mxu3 %v2841_v29 }
 0x39b   :  { %1217 = vmatpush.msrb.mxu0 %v2842_v30  ;;  %1237 = vmatpush.msrb.mxu1 %v2843_v31 }
 0x39c   :  { %1257 = vmatpush.msrb.mxu2 %v2844_v32  ;;  %1277 = vmatpush.msrb.mxu3 %v2845_v33 }
 0x39d   :  { %1218 = vmatpush.msrb.mxu0 %v2846_v35  ;;  %1238 = vmatpush.msrb.mxu1 %v2847_v39 }
 0x39e   :  { %1258 = vmatpush.msrb.mxu2 %v2848_v43  ;;  %1278 = vmatpush.msrb.mxu3 %v2849_v47 }
 0x39f   :  { %1219 = vmatpush.msrb.mxu0 %v2850_v60  ;;  %1239 = vmatpush.msrb.mxu1 %v2851_v44 }
 0x3a0   :  { %1259 = vmatpush.msrb.mxu2 %v2852_v34  ;;  %1279 = vmatpush.msrb.mxu3 %v2853_v36  ;;  %v1050_v34 = vld [vmem:[#allocation4 + $0xc8] sm:$0xff] }
 0x3a1   :  { %1220 = vmatpush.msrb.mxu0 %v2854_v37  ;;  %1240 = vmatpush.msrb.mxu1 %v2855_v40 }
 0x3a2   :  { %1260 = vmatpush.msrb.mxu2 %v2856_v49  ;;  %1280 = vmatpush.msrb.mxu3 %v2857_v46 }
 0x3fe   :  { %v918_v61 = vpop.f32.mrf.mxu0  ;;  %v938_v54 = vpop.f32.mrf.mxu1 }
 0x3ff   :  { %v981_v50 = vadd.f32 %v918_v61, %v897_v55  ;;  %v982_v42 = vadd.f32 %v938_v54, %v898_v48  ;;  %v1052_v48 = vld [vmem:[#allocation4 + $0xd8] sm:$0xff] }
 0x401   :  { %v1431_v52 = vmul.f32 -1.442695, %v981_v50  ;;  %v1432_v63 = vmul.f32 -1.442695, %v982_v42 }
 0x403   :  { %1530 = vpow2.f32 %v1431_v52 }
 0x404   :  { %1532 = vpow2.f32 %v1432_v63 }
 0x405   :  { %v978_v0 = vpop.f32.mrf.mxu3  ;;  %v958_v58 = vpop.f32.mrf.mxu2 }
 0x406   :  { %v984_v41 = vadd.f32 %v978_v0, %v900_v57  ;;  %v983_v20 = vadd.f32 %v958_v58, %v899_v38  ;;  %v1051_v0 = vld [vmem:[#allocation4 + $0xd0] sm:$0xff] }
 0x408   :  { %v1433_v59 = vmul.f32 -1.442695, %v984_v41 }
 0x409   :  { %v1531_v4 = vpop.eup %1530 }
 0x40a   :  { %v1533_v12 = vpop.eup %1532  ;;  %v988_v51 = vadd.f32 1.0, %v1531_v4  ;;  %1534 = vpow2.f32 %v1433_v59 }
 0x40b   :  { %v1007_v56 = vadd.f32 1.0, %v1533_v12 }
 0x40c   :  { %1536 = vrcp.f32 %v988_v51  ;;  %v1000_v53 = vand.u32 2147483648, %v988_v51  ;;  %v998_v15 = vand.u32 2147483647, %v988_v51  ;;  %vm994_vm14 = vweird.f32 %v988_v51 }
 0x40d   :  { %1538 = vrcp.f32 %v1007_v56  ;;  %v1019_v2 = vand.u32 2147483648, %v1007_v56  ;;  %v1017_v8 = vand.u32 2147483647, %v1007_v56  ;;  %vm1013_vm15 = vweird.f32 %v1007_v56 }
 0x40e   :  { %v1001_v18 = vor.u32 1.1754944e-38, %v1000_v53  ;;  %vm999_vm2 = vcmp.eq.f32.partialorder %v998_v15, 8.507059e+37 }
 0x40f   :  { %v1020_v21 = vor.u32 1.1754944e-38, %v1019_v2  ;;  %vm1018_vm3 = vcmp.eq.f32.partialorder %v1017_v8, 8.507059e+37 }
 0x410   :  { %v1535_v11 = vpop.eup %1534 }
 0x411   :  { %v1027_v6 = vadd.f32 1.0, %v1535_v11 }
 0x412   :  { %v1537_v13 = vpop.eup %1536 }
 0x413   :  { %v1539_v17 = vpop.eup %1538  ;;  %v990_v9 = vmul.f32 %v1537_v13, %v988_v51  ;;  %1540 = vrcp.f32 %v1027_v6  ;;  %vm995_vm12 = vweird.f32 %v1537_v13  ;;  %v1039_v33 = vand.u32 2147483648, %v1027_v6 }
 0x414   :  { %v1009_v3 = vmul.f32 %v1539_v17, %v1007_v56  ;;  %1542 = vtanh.f32 %v983_v20  ;;  %vm1014_vm13 = vweird.f32 %v1539_v17  ;;  %vm996_vm0 = vmor %vm994_vm14, %vm995_vm12  ;;  %vm1033_vm5 = vweird.f32 %v1027_v6 }
 0x415   :  { %v991_v16 = vsub.f32 1.0, %v990_v9  ;;  %vm1015_vm1 = vmor %vm1013_vm15, %vm1014_vm13  ;;  %v1037_v35 = vand.u32 2147483647, %v1027_v6  ;;  %v1040_v43 = vor.u32 1.1754944e-38, %v1039_v33 }
 0x416   :  { %v1010_v7 = vsub.f32 1.0, %v1009_v3 }
 0x417   :  { %v992_v19 = vmul.f32 %v1537_v13, %v991_v16  ;;  %vm1038_vm7 = vcmp.eq.f32.partialorder %v1037_v35, 8.507059e+37  ;;  %v1371_v35 = vld [vmem:[#allocation9 + $0x70] sm:$0xff] }
 0x418   :  { %v1011_v45 = vmul.f32 %v1539_v17, %v1010_v7 }
 0x419   :  { %v1541_v14 = vpop.eup %1540  ;;  %v993_v5 = vadd.f32 %v1537_v13, %v992_v19 }
 0x41a   :  { %v1012_v10 = vadd.f32 %v1539_v17, %v1011_v45  ;;  %v1029_v62 = vmul.f32 %v1541_v14, %v1027_v6  ;;  %v1543_v23 = vpop.eup %1542  ;;  %vm1034_vm4 = vweird.f32 %v1541_v14 }
 0x41b   :  { %v997_v22 = vsel %vm996_vm0, %v1537_v13, %v993_v5  ;;  %vm1035_vm6 = vmor %vm1033_vm5, %vm1034_vm4 }
 0x41c   :  { %v1002_v24 = vsel %vm999_vm2, %v1001_v18, %v997_v22  ;;  %v1016_v25 = vsel %vm1015_vm1, %v1539_v17, %v1012_v10  ;;  %v1030_v26 = vsub.f32 1.0, %v1029_v62 }
 0x41d   :  { %v1021_v27 = vsel %vm1018_vm3, %v1020_v21, %v1016_v25  ;;  %v1044_v28 = vmul.f32 %v1543_v23, %v1002_v24 }
 0x41e   :  { %v1043_v29 = vmul.f32 %v1021_v27, %v2507_v1  ;;  %v1031_v30 = vmul.f32 %v1541_v14, %v1030_v26  ;;  %v1049_v1 = vld [vmem:[#allocation4 + $0xc0] sm:$0xff] }
 0x420   :  { %v2575_v31 = vadd.f32 %v1044_v28, %v1043_v29  ;;  %v1032_v32 = vadd.f32 %v1541_v14, %v1031_v30 }
 0x422   :  { %1544 = vtanh.f32 %v2575_v31  ;;  %v1036_v39 = vsel %vm1035_vm6, %v1541_v14, %v1032_v32 }
 0x423   :  { %v1041_v60 = vsel %vm1038_vm7, %v1040_v43, %v1036_v39  ;;  %v1370_v39 = vld [vmem:[#allocation9 + $0x68] sm:$0xff]  ;;  %v1369_v43 = vld [vmem:[#allocation9 + $0x60] sm:$0xff] }
 0x428   :  { %v1545_v47 = vpop.eup %1544 }
 0x429   :  { %v1047_v44 = vmul.f32 %v1545_v47, %v1041_v60  ;;  %v1368_v47 = vld [vmem:[#allocation9 + $0x58] sm:$0xff]  ;;  %v1367_v60 = vld [vmem:[#allocation9 + $0x50] sm:$0xff] }
 0x42b   :  { %1069 = vmatmul.f32.vlgmr.msra.gmra.mxu0 %v1047_v44  ;;  %1089 = vmatmul.f32.vlgmr.msra.gmra.mxu1 %v1047_v44 }
 0x42c   :  { %1109 = vmatmul.f32.vlgmr.msra.gmra.mxu2 %v1047_v44  ;;  %1129 = vmatmul.f32.vlgmr.msra.gmra.mxu3 %v1047_v44  ;;  %v1366_v44 = vld [vmem:[#allocation9 + $0x48] sm:$0xff] }
 0x4a8   :  { %v1070_v36 = vpop.f32.mrf.mxu0  ;;  %v1090_v37 = vpop.f32.mrf.mxu1 }
 0x4a9   :  { %v1133_v40 = vadd.f32 %v1070_v36, %v1049_v1  ;;  %v1134_v49 = vadd.f32 %v1090_v37, %v1050_v34  ;;  %v1365_v1 = vld [vmem:[#allocation9 + $0x40] sm:$0xff]  ;;  %v1364_v34 = vld [vmem:[#allocation9 + $0x38] sm:$0xff]  ;;  %v1202_v37 = vld [vmem:[#allocation4 + $0xe8] sm:$0xff] }
 0x4aa   :  { %v1201_v36 = vld [vmem:[#allocation4 + $0xe0] sm:$0xff] }
 0x4ab   :  { %v1434_v46 = vmul.f32 -1.442695, %v1133_v40  ;;  %v1435_v55 = vmul.f32 -1.442695, %v1134_v49  ;;  %v1363_v40 = vld [vmem:[#allocation9 + $0x30] sm:$0xff] }
 0x4ad   :  { %1546 = vpow2.f32 %v1434_v46 }
 0x4ae   :  { %1548 = vpow2.f32 %v1435_v55 }
 0x4af   :  { %v1130_v61 = vpop.f32.mrf.mxu3  ;;  %v1110_v41 = vpop.f32.mrf.mxu2 }
 0x4b0   :  { %v1136_v54 = vadd.f32 %v1130_v61, %v1052_v48  ;;  %v1135_v51 = vadd.f32 %v1110_v41, %v1051_v0  ;;  %v1362_v61 = vld [vmem:[#allocation9 + $0x28] sm:$0xff] }
 0x4b1   :  { %v1358_v41 = vld [vmem:[#allocation9 + $0x8] sm:$0xff] }
 0x4b2   :  { %v1436_v50 = vmul.f32 -1.442695, %v1136_v54 }
 0x4b3   :  { %v1547_v42 = vpop.eup %1546 }
 0x4b4   :  { %v1549_v52 = vpop.eup %1548  ;;  %v1140_v63 = vadd.f32 1.0, %v1547_v42  ;;  %1550 = vpow2.f32 %v1436_v50  ;;  %v1361_v42 = vld [vmem:[#allocation9 + $0x20] sm:$0xff] }
 0x4b5   :  { %v1159_v57 = vadd.f32 1.0, %v1549_v52  ;;  %v1360_v52 = vld [vmem:[#allocation9 + $0x18] sm:$0xff] }
 0x4b6   :  { %1552 = vrcp.f32 %v1140_v63  ;;  %v1152_v13 = vand.u32 2147483648, %v1140_v63  ;;  %v1150_v9 = vand.u32 2147483647, %v1140_v63  ;;  %vm1146_vm10 = vweird.f32 %v1140_v63 }
 0x4b7   :  { %1554 = vrcp.f32 %v1159_v57  ;;  %v1171_v20 = vand.u32 2147483648, %v1159_v57  ;;  %v1169_v16 = vand.u32 2147483647, %v1159_v57  ;;  %vm1165_vm11 = vweird.f32 %v1159_v57 }
 0x4b8   :  { %v1153_v2 = vor.u32 1.1754944e-38, %v1152_v13  ;;  %vm1151_vm14 = vcmp.eq.f32.partialorder %v1150_v9, 8.507059e+37 }
 0x4b9   :  { %v1172_v45 = vor.u32 1.1754944e-38, %v1171_v20  ;;  %vm1170_vm15 = vcmp.eq.f32.partialorder %v1169_v16, 8.507059e+37 }
 0x4ba   :  { %v1551_v59 = vpop.eup %1550 }
 0x4bb   :  { %v1179_v4 = vadd.f32 1.0, %v1551_v59 }
 0x4bc   :  { %v1553_v12 = vpop.eup %1552 }
 0x4bd   :  { %v1555_v56 = vpop.eup %1554  ;;  %v1142_v38 = vmul.f32 %v1553_v12, %v1140_v63  ;;  %1556 = vrcp.f32 %v1179_v4  ;;  %vm1147_vm8 = vweird.f32 %v1553_v12  ;;  %v1191_v26 = vand.u32 2147483648, %v1179_v4  ;;  %v1204_v63 = vld [vmem:[#allocation4 + $0xf8] sm:$0xff] }
 0x4be   :  { %v1161_v58 = vmul.f32 %v1555_v56, %v1159_v57  ;;  %1558 = vtanh.f32 %v1135_v51  ;;  %vm1166_vm9 = vweird.f32 %v1555_v56  ;;  %vm1148_vm12 = vmor %vm1146_vm10, %vm1147_vm8  ;;  %vm1185_vm1 = vweird.f32 %v1179_v4  ;;  %v1359_v57 = vld [vmem:[#allocation9 + $0x10] sm:$0xff] }
 0x4bf   :  { %v1143_v11 = vsub.f32 1.0, %v1142_v38  ;;  %vm1167_vm13 = vmor %vm1165_vm11, %vm1166_vm9  ;;  %v1189_v27 = vand.u32 2147483647, %v1179_v4  ;;  %v1192_v29 = vor.u32 1.1754944e-38, %v1191_v26 }
 0x4c0   :  { %v1162_v6 = vsub.f32 1.0, %v1161_v58 }
 0x4c1   :  { %v1144_v17 = vmul.f32 %v1553_v12, %v1143_v11  ;;  %vm1190_vm3 = vcmp.eq.f32.partialorder %v1189_v27, 8.507059e+37  ;;  %v1203_v11 = vld [vmem:[#allocation4 + $0xf0] sm:$0xff] }
 0x4c2   :  { %v1163_v3 = vmul.f32 %v1555_v56, %v1162_v6 }
 0x4c3   :  { %v1557_v7 = vpop.eup %1556  ;;  %v1145_v53 = vadd.f32 %v1553_v12, %v1144_v17 }
 0x4c4   :  { %v1164_v19 = vadd.f32 %v1555_v56, %v1163_v3  ;;  %v1181_v15 = vmul.f32 %v1557_v7, %v1179_v4  ;;  %v1559_v14 = vpop.eup %1558  ;;  %vm1186_vm0 = vweird.f32 %v1557_v7  ;;  %v1357_v4 = vld [vmem:[#allocation9] sm:$0xff] }
 0x4c5   :  { %v1149_v8 = vsel %vm1148_vm12, %v1553_v12, %v1145_v53  ;;  %vm1187_vm2 = vmor %vm1185_vm1, %vm1186_vm0 }
 0x4c6   :  { %v1154_v5 = vsel %vm1151_vm14, %v1153_v2, %v1149_v8  ;;  %v1168_v18 = vsel %vm1167_vm13, %v1555_v56, %v1164_v19  ;;  %v1182_v10 = vsub.f32 1.0, %v1181_v15 }
 0x4c7   :  { %v1173_v62 = vsel %vm1170_vm15, %v1172_v45, %v1168_v18  ;;  %v1196_v21 = vmul.f32 %v1559_v14, %v1154_v5 }
 0x4c8   :  { %v1195_v22 = vmul.f32 %v1173_v62, %v2575_v31  ;;  %v1183_v23 = vmul.f32 %v1557_v7, %v1182_v10  ;;  %v1372_v31 = vld [vmem:[#allocation9 + $0x78] sm:$0xff] }
 0x4c9   :  { %1377 = vmatpush.msra.mxu0 %v1372_v31 }
 0x4ca   :  { %v2579_v24 = vadd.f32 %v1196_v21, %v1195_v22  ;;  %v1184_v25 = vadd.f32 %v1557_v7, %v1183_v23 }
 0x4cb   :  { %1378 = vmatpush.msra.mxu0 %v1371_v35 }
 0x4cc   :  { %1560 = vtanh.f32 %v2579_v24  ;;  %v1188_v28 = vsel %vm1187_vm2, %v1557_v7, %v1184_v25 }
 0x4cd   :  { %v1193_v32 = vsel %vm1190_vm3, %v1192_v29, %v1188_v28  ;;  %1379 = vmatpush.msra.mxu0 %v1370_v39 }
 0x4cf   :  { %1380 = vmatpush.msra.mxu0 %v1369_v43 }
 0x4d1   :  { %1381 = vmatpush.msra.mxu0 %v1368_v47 }
 0x4d2   :  { %v1561_v30 = vpop.eup %1560 }
 0x4d3   :  { %v1199_v33 = vmul.f32 %v1561_v30, %v1193_v32  ;;  %1382 = vmatpush.msra.mxu0 %v1367_v60 }
 0x4d5   :  { %1221 = vmatmul.f32.vlgmr.msrb.gmra.mxu0 %v1199_v33  ;;  %1241 = vmatmul.f32.vlgmr.msrb.gmra.mxu1 %v1199_v33 }
 0x4d6   :  { %1261 = vmatmul.f32.vlgmr.msrb.gmra.mxu2 %v1199_v33  ;;  %1281 = vmatmul.f32.vlgmr.msrb.gmra.mxu3 %v1199_v33 }
 0x4d7   :  { %1383 = vmatpush.msra.mxu0 %v1366_v44 }
 0x4d9   :  { %1384 = vmatpush.msra.mxu0 %v1365_v1 }
 0x4db   :  { %1385 = vmatpush.msra.mxu0 %v1364_v34 }
 0x4dd   :  { %1386 = vmatpush.msra.mxu0 %v1363_v40 }
 0x4df   :  { %1387 = vmatpush.msra.mxu0 %v1362_v61 }
 0x4e1   :  { %1388 = vmatpush.msra.mxu0 %v1361_v42 }
 0x4e3   :  { %1389 = vmatpush.msra.mxu0 %v1360_v52 }
 0x4e5   :  { %1390 = vmatpush.msra.mxu0 %v1359_v57 }
 0x4e7   :  { %1391 = vmatpush.msra.mxu0 %v1358_v41 }
 0x4e9   :  { %1392 = vmatpush.msra.mxu0 %v1357_v4 }
 0x552   :  { %v1222_v49 = vpop.f32.mrf.mxu0  ;;  %v1242_v46 = vpop.f32.mrf.mxu1 }
 0x553   :  { %v1285_v55 = vadd.f32 %v1222_v49, %v1201_v36  ;;  %v1286_v48 = vadd.f32 %v1242_v46, %v1202_v37 }
 0x555   :  { %v1437_v54 = vmul.f32 -1.442695, %v1285_v55  ;;  %v1438_v50 = vmul.f32 -1.442695, %v1286_v48 }
 0x557   :  { %1562 = vpow2.f32 %v1437_v54 }
 0x558   :  { %1564 = vpow2.f32 %v1438_v50 }
 0x559   :  { %v1282_v0 = vpop.f32.mrf.mxu3  ;;  %v1262_v6 = vpop.f32.mrf.mxu2 }
 0x55a   :  { %v1288_v59 = vadd.f32 %v1282_v0, %v1204_v63  ;;  %v1287_v9 = vadd.f32 %v1262_v6, %v1203_v11 }
 0x55c   :  { %v1439_v12 = vmul.f32 -1.442695, %v1288_v59 }
 0x55d   :  { %v1563_v51 = vpop.eup %1562 }
 0x55e   :  { %v1565_v56 = vpop.eup %1564  ;;  %v1292_v38 = vadd.f32 1.0, %v1563_v51  ;;  %1566 = vpow2.f32 %v1439_v12 }
 0x55f   :  { %v1311_v58 = vadd.f32 1.0, %v1565_v56 }
 0x560   :  { %1568 = vrcp.f32 %v1292_v38  ;;  %v1304_v19 = vand.u32 2147483648, %v1292_v38  ;;  %v1302_v8 = vand.u32 2147483647, %v1292_v38  ;;  %vm1298_vm6 = vweird.f32 %v1292_v38 }
 0x561   :  { %1570 = vrcp.f32 %v1311_v58  ;;  %v1323_v15 = vand.u32 2147483648, %v1311_v58  ;;  %v1321_v5 = vand.u32 2147483647, %v1311_v58  ;;  %vm1317_vm7 = vweird.f32 %v1311_v58 }
 0x562   :  { %v1305_v62 = vor.u32 1.1754944e-38, %v1304_v19  ;;  %vm1303_vm10 = vcmp.eq.f32.partialorder %v1302_v8, 8.507059e+37 }
 0x563   :  { %v1324_v23 = vor.u32 1.1754944e-38, %v1323_v15  ;;  %vm1322_vm11 = vcmp.eq.f32.partialorder %v1321_v5, 8.507059e+37 }
 0x564   :  { %v1567_v13 = vpop.eup %1566 }
 0x565   :  { %v1331_v20 = vadd.f32 1.0, %v1567_v13 }
 0x566   :  { %v1569_v17 = vpop.eup %1568 }
 0x567   :  { %v1571_v3 = vpop.eup %1570  ;;  %v1294_v16 = vmul.f32 %v1569_v17, %v1292_v38  ;;  %1572 = vrcp.f32 %v1331_v20  ;;  %vm1299_vm4 = vweird.f32 %v1569_v17  ;;  %v1343_v43 = vand.u32 2147483648, %v1331_v20 }
 0x568   :  { %v1313_v7 = vmul.f32 %v1571_v3, %v1311_v58  ;;  %1574 = vtanh.f32 %v1287_v9  ;;  %vm1318_vm5 = vweird.f32 %v1571_v3  ;;  %vm1300_vm8 = vmor %vm1298_vm6, %vm1299_vm4  ;;  %vm1337_vm13 = vweird.f32 %v1331_v20 }
 0x569   :  { %v1295_v53 = vsub.f32 1.0, %v1294_v16  ;;  %vm1319_vm9 = vmor %vm1317_vm7, %vm1318_vm5  ;;  %v1341_v47 = vand.u32 2147483647, %v1331_v20  ;;  %v1344_v44 = vor.u32 1.1754944e-38, %v1343_v43 }
 0x56a   :  { %v1314_v2 = vsub.f32 1.0, %v1313_v7 }
 0x56b   :  { %v1296_v45 = vmul.f32 %v1569_v17, %v1295_v53  ;;  %vm1342_vm15 = vcmp.eq.f32.partialorder %v1341_v47, 8.507059e+37 }
 0x56c   :  { %v1315_v14 = vmul.f32 %v1571_v3, %v1314_v2 }
 0x56d   :  { %v1573_v18 = vpop.eup %1572  ;;  %v1297_v10 = vadd.f32 %v1569_v17, %v1296_v45 }
 0x56e   :  { %v1316_v21 = vadd.f32 %v1571_v3, %v1315_v14  ;;  %v1333_v22 = vmul.f32 %v1573_v18, %v1331_v20  ;;  %v1575_v26 = vpop.eup %1574  ;;  %vm1338_vm12 = vweird.f32 %v1573_v18 }
 0x56f   :  { %v1301_v25 = vsel %vm1300_vm8, %v1569_v17, %v1297_v10  ;;  %vm1339_vm14 = vmor %vm1337_vm13, %vm1338_vm12 }
 0x570   :  { %v1306_v27 = vsel %vm1303_vm10, %v1305_v62, %v1301_v25  ;;  %v1320_v28 = vsel %vm1319_vm9, %v1571_v3, %v1316_v21  ;;  %v1334_v29 = vsub.f32 1.0, %v1333_v22 }
 0x571   :  { %v1325_v30 = vsel %vm1322_vm11, %v1324_v23, %v1320_v28  ;;  %v1348_v32 = vmul.f32 %v1575_v26, %v1306_v27 }
 0x572   :  { %v1347_v33 = vmul.f32 %v1325_v30, %v2579_v24  ;;  %v1335_v31 = vmul.f32 %v1573_v18, %v1334_v29  ;;  %v1449_v24 = vld [vmem:[%s2592_s3] ss:$0 sm:$0xff] }
 0x574   :  { %v1349_v35 = vadd.f32 %v1348_v32, %v1347_v33  ;;  %v1336_v39 = vadd.f32 %v1573_v18, %v1335_v31 }
 0x576   :  { %1576 = vtanh.f32 %v1349_v35  ;;  %v1340_v60 = vsel %vm1339_vm14, %v1573_v18, %v1336_v39 }
 0x577   :  { %v1345_v34 = vsel %vm1342_vm15, %v1344_v44, %v1340_v60 }
 0x57c   :  { %v1577_v1 = vpop.eup %1576 }
 0x57d   :  { %v1351_v36 = vmul.f32 %v1577_v1, %v1345_v34 }
 0x57f   :  { %1393 = vmatmul.f32.vlgmr.msra.gmra.mxu0 %v1351_v36 }
 0x5fc   :  { %v1394_v37 = vpop.f32.mrf.mxu0 }
 0x5fd   :  { %v1395_v40 = vadd.f32 %v1449_v24, %v1394_v37 }
 0x5ff   :  { %1397 = vst [vmem:[#allocation10] sm:$0xff] %v1395_v40 }
 0x600   :  { %1408 = dma.vmem_to_hbm [thread:$0]  %s1404_s8, 128, %s1406_s11, [#allocation6]  }
 0x601   :  { %1742 = dma.done.wait [#allocation6], 128  }
 0x602   :  { %1743 = vsyncadd [#allocation6], 4294967168 }
 0x603   :  { %1413 = vsyncpa [#allocation5], 1 }
 0x604   :  { %1414 = vsyncpa [#allocation8], 1 }
 0x605   :  { %1415 = vsyncpa [#allocation6], 1 }

</bundles_post_ra>
